<compile_context>
chip_gen: v7x
topology: tpu7x:2x2x1
jax: 0.10.0
libtpu: 0.0.40
codegen_flags: <defaults>
</compile_context>

<pallas_src>
import jax
import jax.numpy as jnp
import numpy as np
from jax.experimental import pallas as pl
from jax.experimental.pallas import tpu as pltpu

LANE = 128  # TPU lane width: pad all feature-like dims to a multiple of this.


# ---------------------------------------------------------------------------
# Small helpers
# ---------------------------------------------------------------------------
def _round_up(x, m):
    return ((x + m - 1) // m) * m


def _pad2(x, rows, cols):
    r, c = x.shape
    return jnp.pad(x, ((0, rows - r), (0, cols - c)))


def _vmem_capacity_bytes():
    """Per-core VMEM capacity; falls back to the v7x (smallest) budget."""
    try:
        return int(pltpu.get_tpu_info().vmem_capacity_bytes)
    except Exception:
        return 64 << 20


def _preferred_k_tile():
    """Contraction tile matching the MXU: 128 on <=v5 (128x128 MXU), 256 on v6e/v7x."""
    try:
        kind = jax.devices()[0].device_kind.lower()
    except Exception:
        kind = ""
    for gen in ("v2", "v3", "v4", "v5"):
        if gen in kind:
            return 128
    return 256


def _pick_tiles(n, k_pref):
    """Row tile in {128,256,512}; K tile <= row tile; n padded to a row-tile multiple."""
    n128 = _round_up(max(n, 1), LANE)
    row_tile = min(512, n128)
    if row_tile > 256:
        row_tile = 512
    elif row_tile > 128:
        row_tile = 256
    k_tile = min(k_pref, row_tile)
    n_pad = _round_up(n, row_tile)
    return row_tile, k_tile, n_pad


def _compiler_params(semantics, block_bytes, scratch_bytes, vmem_cap):
    """Explicit VMEM budget from the per-grid-step block footprint, capped to the chip."""
    limit = 2 * block_bytes + scratch_bytes + (4 << 20)  # x2 double buffering + margin
    limit = max(limit, 16 << 20)
    limit = min(limit, max(vmem_cap - (8 << 20), 16 << 20))
    return pltpu.CompilerParams(
        dimension_semantics=semantics, vmem_limit_bytes=int(limit)
    )


# ---------------------------------------------------------------------------
# Kernels
# ---------------------------------------------------------------------------
def _xw_kernel(x_ref, w_ref, out_ref):
    """out_tile = X_tile @ W1  (first GCN layer's linear transform)."""
    out_ref[...] = jnp.dot(
        x_ref[...], w_ref[...], preferred_element_type=jnp.float32
    ).astype(out_ref.dtype)


def _make_agg_kernel(*, out_dim, k_tile, hw_resident, is_last):
    """Aggregation layer: acc += A_tile @ HW_K over compacted nonzero K tiles;
    finalize: relu(acc + b) @ W_next  (mid)  or  log_softmax(relu(acc + b) @ Wc + bc) (last)."""

    def body(kidx_ref, cnt_ref, a_ref, hw_ref, b_ref, w_ref, bc_ref, out_ref, acc_ref):
        i = pl.program_id(0)
        k = pl.program_id(1)
        nk = pl.num_programs(1)

        @pl.when(k == 0)
        def _init():
            acc_ref[...] = jnp.zeros_like(acc_ref)

        # Only the first cnt[i] K steps carry real (nonzero) A_hat tiles; the padded
        # tail repeats the previous block index (no DMA) and is skipped here (no MXU).
        @pl.when(k < cnt_ref[i])
        def _accumulate():
            if hw_resident:
                kt = kidx_ref[i, k]
                start = pl.multiple_of(kt * k_tile, k_tile)
                hw_blk = hw_ref[pl.ds(start, k_tile), :]
            else:
                hw_blk = hw_ref[...]
            acc_ref[...] += jnp.dot(
                a_ref[...], hw_blk, preferred_element_type=jnp.float32
            )

        @pl.when(k == nk - 1)
        def _finalize():
            h = jnp.maximum(acc_ref[...] + b_ref[...], 0.0)
            # TODO(synk): training-mode dropout skipped (eval identity).
            logits = jnp.dot(
                h.astype(w_ref.dtype), w_ref[...], preferred_element_type=jnp.float32
            )
            if is_last:
                logits = logits + bc_ref[...]
                # Mask padded class columns so they do not pollute the softmax.
                col = jax.lax.broadcasted_iota(jnp.int32, logits.shape, 1)
                logits = jnp.where(col < out_dim, logits, -1e30)
                m = jnp.max(logits, axis=1, keepdims=True)
                z = logits - m
                lse = jnp.log(jnp.sum(jnp.exp(z), axis=1, keepdims=True))
                out_ref[...] = (z - lse).astype(out_ref.dtype)
            else:
                out_ref[...] = logits.astype(out_ref.dtype)

    if is_last:
        def kernel(kidx_ref, cnt_ref, a_ref, hw_ref, b_ref, w_ref, bc_ref, out_ref, acc_ref):
            body(kidx_ref, cnt_ref, a_ref, hw_ref, b_ref, w_ref, bc_ref, out_ref, acc_ref)
    else:
        def kernel(kidx_ref, cnt_ref, a_ref, hw_ref, b_ref, w_ref, out_ref, acc_ref):
            body(kidx_ref, cnt_ref, a_ref, hw_ref, b_ref, w_ref, None, out_ref, acc_ref)

    return kernel


# ---------------------------------------------------------------------------
# pallas_call wrappers
# ---------------------------------------------------------------------------
def _xw_call(x_p, w_p, *, row_tile, vmem_cap):
    n_pad, f_pad = x_p.shape
    h_pad = w_p.shape[1]
    block_bytes = row_tile * f_pad * 2 + f_pad * h_pad * 2 + row_tile * h_pad * 2
    return pl.pallas_call(
        _xw_kernel,
        out_shape=jax.ShapeDtypeStruct((n_pad, h_pad), jnp.bfloat16),
        grid_spec=pltpu.PrefetchScalarGridSpec(
            num_scalar_prefetch=0,
            grid=(n_pad // row_tile,),
            in_specs=[
                pl.BlockSpec((row_tile, f_pad), lambda i: (i, 0)),
                pl.BlockSpec((f_pad, h_pad), lambda i: (0, 0)),
            ],
            out_specs=pl.BlockSpec((row_tile, h_pad), lambda i: (i, 0)),
        ),
        compiler_params=_compiler_params(("parallel",), block_bytes, 0, vmem_cap),
    )(x_p, w_p)


def _agg_call(kidx, cnt, a_p, hw, b_p, w_p, bc_p, *, out_dim, is_last,
              row_tile, k_tile, hw_resident, vmem_cap):
    n_pad = a_p.shape[0]
    h_pad = hw.shape[1]
    w_cols = w_p.shape[1]
    n_i = n_pad // row_tile
    n_k = n_pad // k_tile

    def a_map(i, k, ki, ct):
        return (i, ki[i, k])          # compacted nonzero K-tile index (DMA skip on repeats)

    if hw_resident:
        # Whole HW resident in VMEM: constant block index => loaded once for the call.
        hw_spec = pl.BlockSpec((n_pad, h_pad), lambda i, k, ki, ct: (0, 0))
        hw_rows = n_pad
    else:
        hw_spec = pl.BlockSpec((k_tile, h_pad), lambda i, k, ki, ct: (ki[i, k], 0))
        hw_rows = k_tile

    in_specs = [
        pl.BlockSpec((row_tile, k_tile), a_map),
        hw_spec,
        pl.BlockSpec((1, h_pad), lambda i, k, ki, ct: (0, 0)),
        pl.BlockSpec((h_pad, w_cols), lambda i, k, ki, ct: (0, 0)),
    ]
    inputs = [kidx, cnt, a_p, hw, b_p, w_p]
    out_nbytes = 2
    out_dtype = jnp.bfloat16
    if is_last:
        in_specs.append(pl.BlockSpec((1, w_cols), lambda i, k, ki, ct: (0, 0)))
        inputs.append(bc_p)
        out_dtype = jnp.float32
        out_nbytes = 4

    block_bytes = (
        row_tile * k_tile * 2
        + hw_rows * h_pad * 2
        + h_pad * 4
        + h_pad * w_cols * 2
        + (w_cols * 4 if is_last else 0)
        + row_tile * w_cols * out_nbytes
    )
    scratch_bytes = row_tile * h_pad * 4

    kernel = _make_agg_kernel(
        out_dim=out_dim, k_tile=k_tile, hw_resident=hw_resident, is_last=is_last
    )

    return pl.pallas_call(
        kernel,
        out_shape=jax.ShapeDtypeStruct((n_pad, w_cols), out_dtype),
        grid_spec=pltpu.PrefetchScalarGridSpec(
            num_scalar_prefetch=2,
            grid=(n_i, n_k),
            in_specs=in_specs,
            out_specs=pl.BlockSpec((row_tile, w_cols), lambda i, k, ki, ct: (i, 0)),
            scratch_shapes=[pltpu.VMEM((row_tile, h_pad), jnp.float32)],
        ),
        compiler_params=_compiler_params(
            ("parallel", "arbitrary"), block_bytes, scratch_bytes, vmem_cap
        ),
    )(*inputs)


# ---------------------------------------------------------------------------
# Graph glue + forward
# ---------------------------------------------------------------------------
def build_normalized_adjacency(edge_index, num_nodes):
    """Dense A_hat = D^{-1/2} (A + I) D^{-1/2} matching PyG GCNConv gcn_norm.
    Note: self-loops are added unconditionally (assumes edge_index has none)."""
    src, dst = edge_index[0], edge_index[1]
    a = jnp.zeros((num_nodes, num_nodes), jnp.float32)
    a = a.at[dst, src].add(1.0)                    # message flows source -> target
    a = a + jnp.eye(num_nodes, dtype=jnp.float32)  # self loops
    deg = jnp.sum(a, axis=1)
    d_inv_sqrt = jnp.where(deg > 0, 1.0 / jnp.sqrt(deg), 0.0)
    return d_inv_sqrt[:, None] * a * d_inv_sqrt[None, :]


@jax.jit
def node_classifier_forward(a_hat, x, gcn_params, clf_params):
    """gcn_params: list of (W, b), biases shaped (1, hidden);
       clf_params: (wc1, bc1, wc2, bc2)."""
    n, f_in = x.shape
    hidden = gcn_params[0][0].shape[1]
    wc1, bc1, wc2, bc2 = clf_params
    out_dim = wc2.shape[1]

    k_pref = _preferred_k_tile()
    vmem_cap = _vmem_capacity_bytes()
    row_tile, k_tile, n_pad = _pick_tiles(n, k_pref)

    f_pad = _round_up(f_in, LANE)
    h_pad = _round_up(hidden, LANE)
    out_pad = _round_up(out_dim, LANE)

    # Algebraically fuse the classifier head (dropout is identity at inference):
    #   (h @ wc1 + bc1) @ wc2 + bc2 == h @ (wc1 @ wc2) + (bc1 @ wc2 + bc2)
    wc = wc1 @ wc2
    bc = bc1 @ wc2 + bc2

    # Pad to lane-dense shapes; matmul operands in bf16, biases / accumulators in f32.
    # (only one padded copy of A_hat is kept alive; tile sparsity derived from it)
    a_p = _pad2(a_hat, n_pad, n_pad).astype(jnp.bfloat16)
    x_p = _pad2(x, n_pad, f_pad).astype(jnp.bfloat16)

    ws, bs = [], []
    for li, (w, b) in enumerate(gcn_params):
        row_pad = f_pad if li == 0 else h_pad
        ws.append(_pad2(w, row_pad, h_pad).astype(jnp.bfloat16))
        bs.append(_pad2(b, 1, h_pad).astype(jnp.float32))
    wc_p = _pad2(wc, h_pad, out_pad).astype(jnp.bfloat16)
    bc_p = _pad2(bc, 1, out_pad).astype(jnp.float32)

    # Block sparsity of A_hat at (row_tile, k_tile) granularity -> compacted per-row-tile
    # list of nonzero K-tile indices (padded by repeating the last nonzero index so the
    # pipeline's block index does not change => padded steps issue no DMA), plus counts.
    n_i = n_pad // row_tile
    n_k = n_pad // k_tile
    nz = (a_p != 0).reshape(n_i, row_tile, n_k, k_tile).any(axis=(1, 3))
    cnt = jnp.sum(nz, axis=1).astype(jnp.int32)                       # (n_i,)
    order = jnp.argsort(jnp.where(nz, 0, 1).astype(jnp.int32), axis=1).astype(jnp.int32)
    pos = jnp.arange(n_k, dtype=jnp.int32)[None, :]
    sel = jnp.minimum(pos, jnp.maximum(cnt[:, None] - 1, 0))
    kidx = jnp.take_along_axis(order, sel, axis=1).astype(jnp.int32)  # (n_i, n_k)

    # Keep HW fully VMEM-resident when the chip budget allows (removes HBM re-stream).
    hw_bytes = n_pad * h_pad * 2
    hw_resident = (2 * hw_bytes + row_tile * h_pad * 4 + (16 << 20)) <= vmem_cap

    # First GCN layer's linear transform, then fused aggregate(+next linear) layers,
    # finishing with the fused classifier head + masked log_softmax.
    hw = _xw_call(x_p, ws[0], row_tile=row_tile, vmem_cap=vmem_cap)
    for li in range(len(gcn_params) - 1):
        hw = _agg_call(
            kidx, cnt, a_p, hw, bs[li], ws[li + 1], None,
            out_dim=out_dim, is_last=False,
            row_tile=row_tile, k_tile=k_tile,
            hw_resident=hw_resident, vmem_cap=vmem_cap,
        )
    out_full = _agg_call(
        kidx, cnt, a_p, hw, bs[-1], wc_p, bc_p,
        out_dim=out_dim, is_last=True,
        row_tile=row_tile, k_tile=k_tile,
        hw_resident=hw_resident, vmem_cap=vmem_cap,
    )

    return out_full[:n, :out_dim]


# ---------------------------------------------------------------------------
# Demo / self-test
# ---------------------------------------------------------------------------
if __name__ == "__main__":
    # Small deterministic problem: 16 nodes on a bidirectional ring graph.
    num_nodes = 16
    input_dim = 8
    hidden_dim = 32
    output_dim = 4
    num_graph_layers = 2
    dropout_pct = 0.5  # unused at inference (eval semantics)

    key = jax.random.PRNGKey(0)
    k_x, k_w = jax.random.split(key)

    x = jax.random.normal(k_x, (num_nodes, input_dim), dtype=jnp.float32)

    idx = jnp.arange(num_nodes)
    src = jnp.concatenate([idx, (idx + 1) % num_nodes])
    dst = jnp.concatenate([(idx + 1) % num_nodes, idx])
    edge_index = jnp.stack([src, dst], axis=0)

    a_hat = build_normalized_adjacency(edge_index, num_nodes)

    def init_linear(k, fan_in, fan_out):
        kw, _ = jax.random.split(k)
        scale = jnp.sqrt(2.0 / (fan_in + fan_out)).astype(jnp.float32)
        w = jax.random.normal(kw, (fan_in, fan_out), dtype=jnp.float32) * scale
        b = jnp.zeros((1, fan_out), dtype=jnp.float32)
        return w, b

    keys = jax.random.split(k_w, num_graph_layers + 2)
    gcn_params = []
    fan_in = input_dim
    for i in range(num_graph_layers):
        gcn_params.append(init_linear(keys[i], fan_in, hidden_dim))
        fan_in = hidden_dim

    wc1, bc1 = init_linear(keys[num_graph_layers], hidden_dim, hidden_dim)
    wc2, bc2 = init_linear(keys[num_graph_layers + 1], hidden_dim, output_dim)
    clf_params = (wc1, bc1, wc2, bc2)

    out = node_classifier_forward(a_hat, x, gcn_params, clf_params)
    out = jax.block_until_ready(out)

    # Shape + normalization checks.
    assert out.shape == (num_nodes, output_dim)
    assert jnp.allclose(jnp.sum(jnp.exp(out), axis=1), 1.0, atol=1e-4)

    # Full-precision host reference (eval-mode forward).
    a_np = np.asarray(a_hat, np.float64)
    h_np = np.asarray(x, np.float64)
    for (w, b) in gcn_params:
        h_np = a_np @ (h_np @ np.asarray(w, np.float64)) + np.asarray(b, np.float64)
        h_np = np.maximum(h_np, 0.0)
    logits = (h_np @ np.asarray(wc1, np.float64) + np.asarray(bc1, np.float64)) \
        @ np.asarray(wc2, np.float64) + np.asarray(bc2, np.float64)
    m = logits.max(axis=1, keepdims=True)
    ref = logits - m - np.log(np.exp(logits - m).sum(axis=1, keepdims=True))
    assert np.max(np.abs(np.asarray(out, np.float64) - ref)) < 5e-2

    print("KERNEL_OK")
</pallas_src>

<mosaic_0001>
module attributes {stable_mosaic.version = 11 : i64} {
  func.func @_xw_kernel(%arg0: i32, %arg1: memref<128x128xbf16, #tpu.memory_space<vmem>>, %arg2: memref<128x128xbf16, #tpu.memory_space<vmem>>, %arg3: memref<128x128xbf16, #tpu.memory_space<vmem>>) attributes {dimension_semantics = [#tpu.dimension_semantics<parallel>], iteration_bounds = array<i64: 1>, scalar_prefetch = 0 : i64, scratch_operands = 0 : i64, tpu.core_type = #tpu.core_type<tc>, window_params = [{transform_indices = @transform_0, window_bounds = array<i64: 128, 128>}, {pipeline_mode = #tpu.pipeline_mode<synchronous>, transform_indices = @transform_1, window_bounds = array<i64: 128, 128>}, {transform_indices = @transform_2, window_bounds = array<i64: 128, 128>}]} {
    %c0 = arith.constant 0 : index
    %c0_0 = arith.constant 0 : index
    %0 = vector.load %arg1[%c0, %c0_0] : memref<128x128xbf16, #tpu.memory_space<vmem>>, vector<128x128xbf16>
    %c0_1 = arith.constant 0 : index
    %c0_2 = arith.constant 0 : index
    %1 = vector.load %arg2[%c0_1, %c0_2] : memref<128x128xbf16, #tpu.memory_space<vmem>>, vector<128x128xbf16>
    %cst = arith.constant dense<0.000000e+00> : vector<128x128xf32>
    %2 = tpu.matmul %0, %1, %cst {dimension_numbers = #tpu.dot_dimension_numbers<[1], [0], [0], [1], [0, 0, 1, 1], [], []>} : vector<128x128xbf16>, vector<128x128xbf16>, vector<128x128xf32> -> vector<128x128xf32>
    %3 = arith.truncf %2 : vector<128x128xf32> to vector<128x128xbf16>
    %c0_3 = arith.constant 0 : index
    %c0_4 = arith.constant 0 : index
    %4 = vector.load %arg3[%c0_3, %c0_4] : memref<128x128xbf16, #tpu.memory_space<vmem>>, vector<128x128xbf16>
    tpu.vector_store %arg3[%c0_3, %c0_4], %3 {strides = array<i32>} : memref<128x128xbf16, #tpu.memory_space<vmem>>, vector<128x128xbf16>,
    return
  }
  func.func @transform_0(%arg0: i32) -> (i32, i32) {
    %c0_i32 = arith.constant 0 : i32
    %c0_i32_0 = arith.constant 0 : i32
    return %arg0, %c0_i32 : i32, i32
  }
  func.func @transform_1(%arg0: i32) -> (i32, i32) {
    %c0_i32 = arith.constant 0 : i32
    %c0_i32_0 = arith.constant 0 : i32
    %c0_i32_1 = arith.constant 0 : i32
    return %c0_i32, %c0_i32_0 : i32, i32
  }
  func.func @transform_2(%arg0: i32) -> (i32, i32) {
    %c0_i32 = arith.constant 0 : i32
    %c0_i32_0 = arith.constant 0 : i32
    return %arg0, %c0_i32 : i32, i32
  }
}

module attributes {stable_mosaic.version = 11 : i64} {
  func.func @kernel(%arg0: i32, %arg1: i32, %arg2: memref<1x1xi32, #tpu.memory_space<smem>>, %arg3: memref<1xi32, #tpu.memory_space<smem>>, %arg4: memref<128x128xbf16, #tpu.memory_space<vmem>>, %arg5: memref<128x128xbf16, #tpu.memory_space<vmem>>, %arg6: memref<1x128xf32, #tpu.memory_space<vmem>>, %arg7: memref<128x128xbf16, #tpu.memory_space<vmem>>, %arg8: memref<128x128xbf16, #tpu.memory_space<vmem>>, %arg9: memref<128x128xf32, #tpu.memory_space<vmem>>) attributes {dimension_semantics = [#tpu.dimension_semantics<parallel>, #tpu.dimension_semantics<arbitrary>], iteration_bounds = array<i64: 1, 1>, scalar_prefetch = 2 : i64, scratch_operands = 1 : i64, tpu.core_type = #tpu.core_type<tc>, window_params = [{transform_indices = @transform_0, window_bounds = array<i64: 128, 128>}, {pipeline_mode = #tpu.pipeline_mode<synchronous>, transform_indices = @transform_1, window_bounds = array<i64: 128, 128>}, {pipeline_mode = #tpu.pipeline_mode<synchronous>, transform_indices = @transform_2, window_bounds = array<i64: 1, 128>}, {pipeline_mode = #tpu.pipeline_mode<synchronous>, transform_indices = @transform_3, window_bounds = array<i64: 128, 128>}, {transform_indices = @transform_4, window_bounds = array<i64: 128, 128>}]} {
    %c0_i32 = arith.constant 0 : i32
    %0 = arith.cmpi eq, %arg1, %c0_i32 : i32
    %1 = arith.extui %0 : i1 to i32
    %c0_i32_0 = arith.constant 0 : i32
    %2 = arith.cmpi ne, %1, %c0_i32_0 : i32
    scf.if %2 {
      %cst = arith.constant 0.000000e+00 : f32
      %11 = vector.broadcast %cst : f32 to vector<128x128xf32>
      %c0 = arith.constant 0 : index
      %c0_4 = arith.constant 0 : index
      %12 = vector.load %arg9[%c0, %c0_4] : memref<128x128xf32, #tpu.memory_space<vmem>>, vector<128x128xf32>
      tpu.vector_store %arg9[%c0, %c0_4], %11 {strides = array<i32>} : memref<128x128xf32, #tpu.memory_space<vmem>>, vector<128x128xf32>,
    } else {
    }
    %3 = arith.index_cast %arg0 : i32 to index
    %4 = memref.load %arg3[%3] : memref<1xi32, #tpu.memory_space<smem>>
    %5 = arith.cmpi slt, %arg1, %4 : i32
    %6 = arith.extui %5 : i1 to i32
    %c0_i32_1 = arith.constant 0 : i32
    %7 = arith.cmpi ne, %6, %c0_i32_1 : i32
    scf.if %7 {
      %11 = arith.index_cast %arg0 : i32 to index
      %12 = arith.index_cast %arg1 : i32 to index
      %13 = memref.load %arg2[%11, %12] : memref<1x1xi32, #tpu.memory_space<smem>>
      %c128_i32 = arith.constant 128 : i32
      %14 = arith.muli %13, %c128_i32 : i32
      %15 = tpu.assume_multiple %14, 128 : i32
      %16 = arith.index_cast %15 : i32 to index
      %c0 = arith.constant 0 : index
      %17 = vector.load %arg5[%16, %c0] : memref<128x128xbf16, #tpu.memory_space<vmem>>, vector<128x128xbf16>
      %c0_4 = arith.constant 0 : index
      %c0_5 = arith.constant 0 : index
      %18 = vector.load %arg9[%c0_4, %c0_5] : memref<128x128xf32, #tpu.memory_space<vmem>>, vector<128x128xf32>
      %c0_6 = arith.constant 0 : index
      %c0_7 = arith.constant 0 : index
      %19 = vector.load %arg4[%c0_6, %c0_7] : memref<128x128xbf16, #tpu.memory_space<vmem>>, vector<128x128xbf16>
      %cst = arith.constant dense<0.000000e+00> : vector<128x128xf32>
      %20 = tpu.matmul %19, %17, %cst {dimension_numbers = #tpu.dot_dimension_numbers<[1], [0], [0], [1], [0, 0, 1, 1], [], []>} : vector<128x128xbf16>, vector<128x128xbf16>, vector<128x128xf32> -> vector<128x128xf32>
      %21 = arith.addf %18, %20 : vector<128x128xf32>
      %c0_8 = arith.constant 0 : index
      %c0_9 = arith.constant 0 : index
      %22 = vector.load %arg9[%c0_8, %c0_9] : memref<128x128xf32, #tpu.memory_space<vmem>>, vector<128x128xf32>
      tpu.vector_store %arg9[%c0_8, %c0_9], %21 {strides = array<i32>} : memref<128x128xf32, #tpu.memory_space<vmem>>, vector<128x128xf32>,
    } else {
    }
    %c0_i32_2 = arith.constant 0 : i32
    %8 = arith.cmpi eq, %arg1, %c0_i32_2 : i32
    %9 = arith.extui %8 : i1 to i32
    %c0_i32_3 = arith.constant 0 : i32
    %10 = arith.cmpi ne, %9, %c0_i32_3 : i32
    scf.if %10 {
      %c0 = arith.constant 0 : index
      %c0_4 = arith.constant 0 : index
      %11 = vector.load %arg9[%c0, %c0_4] : memref<128x128xf32, #tpu.memory_space<vmem>>, vector<128x128xf32>
      %c0_5 = arith.constant 0 : index
      %c0_6 = arith.constant 0 : index
      %12 = vector.load %arg6[%c0_5, %c0_6] : memref<1x128xf32, #tpu.memory_space<vmem>>, vector<1x128xf32>
      %13 = vector.broadcast %12 : vector<1x128xf32> to vector<128x128xf32>
      %14 = arith.addf %11, %13 : vector<128x128xf32>
      %cst = arith.constant 0.000000e+00 : f32
      %15 = vector.broadcast %cst : f32 to vector<128x128xf32>
      %16 = arith.maximumf %14, %15 : vector<128x128xf32>
      %17 = arith.truncf %16 : vector<128x128xf32> to vector<128x128xbf16>
      %c0_7 = arith.constant 0 : index
      %c0_8 = arith.constant 0 : index
      %18 = vector.load %arg7[%c0_7, %c0_8] : memref<128x128xbf16, #tpu.memory_space<vmem>>, vector<128x128xbf16>
      %cst_9 = arith.constant dense<0.000000e+00> : vector<128x128xf32>
      %19 = tpu.matmul %17, %18, %cst_9 {dimension_numbers = #tpu.dot_dimension_numbers<[1], [0], [0], [1], [0, 0, 1, 1], [], []>} : vector<128x128xbf16>, vector<128x128xbf16>, vector<128x128xf32> -> vector<128x128xf32>
      %20 = arith.truncf %19 : vector<128x128xf32> to vector<128x128xbf16>
      %c0_10 = arith.constant 0 : index
      %c0_11 = arith.constant 0 : index
      %21 = vector.load %arg8[%c0_10, %c0_11] : memref<128x128xbf16, #tpu.memory_space<vmem>>, vector<128x128xbf16>
      tpu.vector_store %arg8[%c0_10, %c0_11], %20 {strides = array<i32>} : memref<128x128xbf16, #tpu.memory_space<vmem>>, vector<128x128xbf16>,
    } else {
    }
    return
  }
  func.func @transform_0(%arg0: i32, %arg1: i32, %arg2: memref<1x1xi32, #tpu.memory_space<smem>>, %arg3: memref<1xi32, #tpu.memory_space<smem>>) -> (i32, i32) {
    %0 = arith.index_cast %arg0 : i32 to index
    %1 = arith.index_cast %arg1 : i32 to index
    %2 = memref.load %arg2[%0, %1] : memref<1x1xi32, #tpu.memory_space<smem>>
    %c0_i32 = arith.constant 0 : i32
    return %arg0, %2 : i32, i32
  }
  func.func @transform_1(%arg0: i32, %arg1: i32, %arg2: memref<1x1xi32, #tpu.memory_space<smem>>, %arg3: memref<1xi32, #tpu.memory_space<smem>>) -> (i32, i32) {
    %c0_i32 = arith.constant 0 : i32
    %c0_i32_0 = arith.constant 0 : i32
    %c0_i32_1 = arith.constant 0 : i32
    return %c0_i32, %c0_i32_0 : i32, i32
  }
  func.func @transform_2(%arg0: i32, %arg1: i32, %arg2: memref<1x1xi32, #tpu.memory_space<smem>>, %arg3: memref<1xi32, #tpu.memory_space<smem>>) -> (i32, i32) {
    %c0_i32 = arith.constant 0 : i32
    %c0_i32_0 = arith.constant 0 : i32
    %c0_i32_1 = arith.constant 0 : i32
    return %c0_i32, %c0_i32_0 : i32, i32
  }
  func.func @transform_3(%arg0: i32, %arg1: i32, %arg2: memref<1x1xi32, #tpu.memory_space<smem>>, %arg3: memref<1xi32, #tpu.memory_space<smem>>) -> (i32, i32) {
    %c0_i32 = arith.constant 0 : i32
    %c0_i32_0 = arith.constant 0 : i32
    %c0_i32_1 = arith.constant 0 : i32
    return %c0_i32, %c0_i32_0 : i32, i32
  }
  func.func @transform_4(%arg0: i32, %arg1: i32, %arg2: memref<1x1xi32, #tpu.memory_space<smem>>, %arg3: memref<1xi32, #tpu.memory_space<smem>>) -> (i32, i32) {
    %c0_i32 = arith.constant 0 : i32
    %c0_i32_0 = arith.constant 0 : i32
    return %arg0, %c0_i32 : i32, i32
  }
}

module attributes {stable_mosaic.version = 11 : i64} {
  func.func @kernel(%arg0: i32, %arg1: i32, %arg2: memref<1x1xi32, #tpu.memory_space<smem>>, %arg3: memref<1xi32, #tpu.memory_space<smem>>, %arg4: memref<128x128xbf16, #tpu.memory_space<vmem>>, %arg5: memref<128x128xbf16, #tpu.memory_space<vmem>>, %arg6: memref<1x128xf32, #tpu.memory_space<vmem>>, %arg7: memref<128x128xbf16, #tpu.memory_space<vmem>>, %arg8: memref<1x128xf32, #tpu.memory_space<vmem>>, %arg9: memref<128x128xf32, #tpu.memory_space<vmem>>, %arg10: memref<128x128xf32, #tpu.memory_space<vmem>>) attributes {dimension_semantics = [#tpu.dimension_semantics<parallel>, #tpu.dimension_semantics<arbitrary>], iteration_bounds = array<i64: 1, 1>, scalar_prefetch = 2 : i64, scratch_operands = 1 : i64, tpu.core_type = #tpu.core_type<tc>, window_params = [{transform_indices = @transform_0, window_bounds = array<i64: 128, 128>}, {pipeline_mode = #tpu.pipeline_mode<synchronous>, transform_indices = @transform_1, window_bounds = array<i64: 128, 128>}, {pipeline_mode = #tpu.pipeline_mode<synchronous>, transform_indices = @transform_2, window_bounds = array<i64: 1, 128>}, {pipeline_mode = #tpu.pipeline_mode<synchronous>, transform_indices = @transform_3, window_bounds = array<i64: 128, 128>}, {pipeline_mode = #tpu.pipeline_mode<synchronous>, transform_indices = @transform_4, window_bounds = array<i64: 1, 128>}, {transform_indices = @transform_5, window_bounds = array<i64: 128, 128>}]} {
    %c0_i32 = arith.constant 0 : i32
    %0 = arith.cmpi eq, %arg1, %c0_i32 : i32
    %1 = arith.extui %0 : i1 to i32
    %c0_i32_0 = arith.constant 0 : i32
    %2 = arith.cmpi ne, %1, %c0_i32_0 : i32
    scf.if %2 {
      %cst = arith.constant 0.000000e+00 : f32
      %11 = vector.broadcast %cst : f32 to vector<128x128xf32>
      %c0 = arith.constant 0 : index
      %c0_4 = arith.constant 0 : index
      %12 = vector.load %arg10[%c0, %c0_4] : memref<128x128xf32, #tpu.memory_space<vmem>>, vector<128x128xf32>
      tpu.vector_store %arg10[%c0, %c0_4], %11 {strides = array<i32>} : memref<128x128xf32, #tpu.memory_space<vmem>>, vector<128x128xf32>,
    } else {
    }
    %3 = arith.index_cast %arg0 : i32 to index
    %4 = memref.load %arg3[%3] : memref<1xi32, #tpu.memory_space<smem>>
    %5 = arith.cmpi slt, %arg1, %4 : i32
    %6 = arith.extui %5 : i1 to i32
    %c0_i32_1 = arith.constant 0 : i32
    %7 = arith.cmpi ne, %6, %c0_i32_1 : i32
    scf.if %7 {
      %11 = arith.index_cast %arg0 : i32 to index
      %12 = arith.index_cast %arg1 : i32 to index
      %13 = memref.load %arg2[%11, %12] : memref<1x1xi32, #tpu.memory_space<smem>>
      %c128_i32 = arith.constant 128 : i32
      %14 = arith.muli %13, %c128_i32 : i32
      %15 = tpu.assume_multiple %14, 128 : i32
      %16 = arith.index_cast %15 : i32 to index
      %c0 = arith.constant 0 : index
      %17 = vector.load %arg5[%16, %c0] : memref<128x128xbf16, #tpu.memory_space<vmem>>, vector<128x128xbf16>
      %c0_4 = arith.constant 0 : index
      %c0_5 = arith.constant 0 : index
      %18 = vector.load %arg10[%c0_4, %c0_5] : memref<128x128xf32, #tpu.memory_space<vmem>>, vector<128x128xf32>
      %c0_6 = arith.constant 0 : index
      %c0_7 = arith.constant 0 : index
      %19 = vector.load %arg4[%c0_6, %c0_7] : memref<128x128xbf16, #tpu.memory_space<vmem>>, vector<128x128xbf16>
      %cst = arith.constant dense<0.000000e+00> : vector<128x128xf32>
      %20 = tpu.matmul %19, %17, %cst {dimension_numbers = #tpu.dot_dimension_numbers<[1], [0], [0], [1], [0, 0, 1, 1], [], []>} : vector<128x128xbf16>, vector<128x128xbf16>, vector<128x128xf32> -> vector<128x128xf32>
      %21 = arith.addf %18, %20 : vector<128x128xf32>
      %c0_8 = arith.constant 0 : index
      %c0_9 = arith.constant 0 : index
      %22 = vector.load %arg10[%c0_8, %c0_9] : memref<128x128xf32, #tpu.memory_space<vmem>>, vector<128x128xf32>
      tpu.vector_store %arg10[%c0_8, %c0_9], %21 {strides = array<i32>} : memref<128x128xf32, #tpu.memory_space<vmem>>, vector<128x128xf32>,
    } else {
    }
    %c0_i32_2 = arith.constant 0 : i32
    %8 = arith.cmpi eq, %arg1, %c0_i32_2 : i32
    %9 = arith.extui %8 : i1 to i32
    %c0_i32_3 = arith.constant 0 : i32
    %10 = arith.cmpi ne, %9, %c0_i32_3 : i32
    scf.if %10 {
      %c0 = arith.constant 0 : index
      %c0_4 = arith.constant 0 : index
      %11 = vector.load %arg10[%c0, %c0_4] : memref<128x128xf32, #tpu.memory_space<vmem>>, vector<128x128xf32>
      %c0_5 = arith.constant 0 : index
      %c0_6 = arith.constant 0 : index
      %12 = vector.load %arg6[%c0_5, %c0_6] : memref<1x128xf32, #tpu.memory_space<vmem>>, vector<1x128xf32>
      %13 = vector.broadcast %12 : vector<1x128xf32> to vector<128x128xf32>
      %14 = arith.addf %11, %13 : vector<128x128xf32>
      %cst = arith.constant 0.000000e+00 : f32
      %15 = vector.broadcast %cst : f32 to vector<128x128xf32>
      %16 = arith.maximumf %14, %15 : vector<128x128xf32>
      %17 = arith.truncf %16 : vector<128x128xf32> to vector<128x128xbf16>
      %c0_7 = arith.constant 0 : index
      %c0_8 = arith.constant 0 : index
      %18 = vector.load %arg7[%c0_7, %c0_8] : memref<128x128xbf16, #tpu.memory_space<vmem>>, vector<128x128xbf16>
      %cst_9 = arith.constant dense<0.000000e+00> : vector<128x128xf32>
      %19 = tpu.matmul %17, %18, %cst_9 {dimension_numbers = #tpu.dot_dimension_numbers<[1], [0], [0], [1], [0, 0, 1, 1], [], []>} : vector<128x128xbf16>, vector<128x128xbf16>, vector<128x128xf32> -> vector<128x128xf32>
      %c0_10 = arith.constant 0 : index
      %c0_11 = arith.constant 0 : index
      %20 = vector.load %arg8[%c0_10, %c0_11] : memref<1x128xf32, #tpu.memory_space<vmem>>, vector<1x128xf32>
      %21 = vector.broadcast %20 : vector<1x128xf32> to vector<128x128xf32>
      %22 = arith.addf %19, %21 : vector<128x128xf32>
      %23 = tpu.iota {dimensions = array<i32: 1>} : vector<128x128xi32>
      %c4_i32 = arith.constant 4 : i32
      %24 = vector.broadcast %c4_i32 : i32 to vector<128x128xi32>
      %25 = arith.cmpi slt, %23, %24 : vector<128x128xi32>
      %cst_12 = arith.constant -1.000000e+30 : f32
      %26 = vector.broadcast %cst_12 : f32 to vector<128x128xf32>
      %27 = arith.select %25, %22, %26 : vector<128x128xi1>, vector<128x128xf32>
      %cst_13 = arith.constant dense<0xFF800000> : vector<128xf32>
      %28 = vector.multi_reduction <maximumf>, %27, %cst_13 [1] : vector<128x128xf32> to vector<128xf32>
      %29 = vector.shape_cast %28 : vector<128xf32> to vector<128x1xf32>
      %30 = vector.broadcast %29 : vector<128x1xf32> to vector<128x128xf32>
      %31 = arith.subf %27, %30 : vector<128x128xf32>
      %32 = math.exp %31 : vector<128x128xf32>
      %cst_14 = arith.constant dense<0.000000e+00> : vector<128xf32>
      %33 = vector.multi_reduction <add>, %32, %cst_14 [1] : vector<128x128xf32> to vector<128xf32>
      %34 = vector.shape_cast %33 : vector<128xf32> to vector<128x1xf32>
      %35 = math.log %34 : vector<128x1xf32>
      %36 = vector.broadcast %35 : vector<128x1xf32> to vector<128x128xf32>
      %37 = arith.subf %31, %36 : vector<128x128xf32>
      %c0_15 = arith.constant 0 : index
      %c0_16 = arith.constant 0 : index
      %38 = vector.load %arg9[%c0_15, %c0_16] : memref<128x128xf32, #tpu.memory_space<vmem>>, vector<128x128xf32>
      tpu.vector_store %arg9[%c0_15, %c0_16], %37 {strides = array<i32>} : memref<128x128xf32, #tpu.memory_space<vmem>>, vector<128x128xf32>,
    } else {
    }
    return
  }
  func.func @transform_0(%arg0: i32, %arg1: i32, %arg2: memref<1x1xi32, #tpu.memory_space<smem>>, %arg3: memref<1xi32, #tpu.memory_space<smem>>) -> (i32, i32) {
    %0 = arith.index_cast %arg0 : i32 to index
    %1 = arith.index_cast %arg1 : i32 to index
    %2 = memref.load %arg2[%0, %1] : memref<1x1xi32, #tpu.memory_space<smem>>
    %c0_i32 = arith.constant 0 : i32
    return %arg0, %2 : i32, i32
  }
  func.func @transform_1(%arg0: i32, %arg1: i32, %arg2: memref<1x1xi32, #tpu.memory_space<smem>>, %arg3: memref<1xi32, #tpu.memory_space<smem>>) -> (i32, i32) {
    %c0_i32 = arith.constant 0 : i32
    %c0_i32_0 = arith.constant 0 : i32
    %c0_i32_1 = arith.constant 0 : i32
    return %c0_i32, %c0_i32_0 : i32, i32
  }
  func.func @transform_2(%arg0: i32, %arg1: i32, %arg2: memref<1x1xi32, #tpu.memory_space<smem>>, %arg3: memref<1xi32, #tpu.memory_space<smem>>) -> (i32, i32) {
    %c0_i32 = arith.constant 0 : i32
    %c0_i32_0 = arith.constant 0 : i32
    %c0_i32_1 = arith.constant 0 : i32
    return %c0_i32, %c0_i32_0 : i32, i32
  }
  func.func @transform_3(%arg0: i32, %arg1: i32, %arg2: memref<1x1xi32, #tpu.memory_space<smem>>, %arg3: memref<1xi32, #tpu.memory_space<smem>>) -> (i32, i32) {
    %c0_i32 = arith.constant 0 : i32
    %c0_i32_0 = arith.constant 0 : i32
    %c0_i32_1 = arith.constant 0 : i32
    return %c0_i32, %c0_i32_0 : i32, i32
  }
  func.func @transform_4(%arg0: i32, %arg1: i32, %arg2: memref<1x1xi32, #tpu.memory_space<smem>>, %arg3: memref<1xi32, #tpu.memory_space<smem>>) -> (i32, i32) {
    %c0_i32 = arith.constant 0 : i32
    %c0_i32_0 = arith.constant 0 : i32
    %c0_i32_1 = arith.constant 0 : i32
    return %c0_i32, %c0_i32_0 : i32, i32
  }
  func.func @transform_5(%arg0: i32, %arg1: i32, %arg2: memref<1x1xi32, #tpu.memory_space<smem>>, %arg3: memref<1xi32, #tpu.memory_space<smem>>) -> (i32, i32) {
    %c0_i32 = arith.constant 0 : i32
    %c0_i32_0 = arith.constant 0 : i32
    return %arg0, %c0_i32 : i32, i32
  }
}

</mosaic_0001>

<bundles_post_ra>
// kernel: node_classifier_forward.3
= control target key start
LH: loop header
LB: loop body
LE: loop exit
PB: predicated region body
PF: predicated region fallthrough
CT: control target
= control target key end

     0   :  { %s583_s1 = inlined_call_operand.vmem [shape: bf16[128,128], index: 1, kind: input, shape index: {}]   ;;  %s584_s0 = inlined_call_operand.vmem [shape: bf16[128,128], index: 0, kind: input, shape index: {}]   ;;  %s585_s2 = inlined_call_operand.vmem [shape: bf16[128,128], index: 2, kind: output, shape index: {}]  }
   0x1   :  { %v480_v0 = vld [vmem:[%s583_s1] sm:$0xff]   ;;  %v481_v1 = vld [vmem:[%s583_s1 + $0x8] sm:$0xff]   ;;  %v482_v2 = vld [vmem:[%s583_s1 + $0x10] sm:$0xff]  }
   0x2   :  { %432 = vmatprep.subr.bf16.mxu0 %v480_v0  ;;  %464 = vmatprep.subr.bf16.mxu1 %v480_v0  ;;  %v483_v3 = vld [vmem:[%s583_s1 + $0x18] sm:$0xff]   ;;  %v488_v4 = vld [vmem:[%s584_s0] sm:$0xff]   ;;  %v485_v7 = vld [vmem:[%s583_s1 + $0x28] sm:$0xff]  }
   0x3   :  { %433 = vmatpush3.bf16.msra.mxu0 %v480_v0  ;;  %472 = vmatpush3.bf16.msra.mxu1 %v480_v0  ;;  %v489_v5 = vld [vmem:[%s584_s0 + $0x20] sm:$0xff]   ;;  %v486_v8 = vld [vmem:[%s583_s1 + $0x30] sm:$0xff]   ;;  %v487_v9 = vld [vmem:[%s583_s1 + $0x38] sm:$0xff]  }
   0x4   :  { %434 = vmatprep.subr.bf16.mxu0 %v481_v1  ;;  %465 = vmatprep.subr.bf16.mxu1 %v481_v1  ;;  %v484_v6 = vld [vmem:[%s583_s1 + $0x20] sm:$0xff]   ;;  %v490_v10 = vld [vmem:[%s584_s0 + $0x8] sm:$0xff]   ;;  %v492_v12 = vld [vmem:[%s584_s0 + $0x10] sm:$0xff]  }
   0x5   :  { %448 = vmatprep.mubr.bf16.mxu0 %v488_v4  ;;  %456 = vmatprep.mubr.bf16.mxu1 %v489_v5  ;;  %v491_v11 = vld [vmem:[%s584_s0 + $0x28] sm:$0xff]   ;;  %v493_v13 = vld [vmem:[%s584_s0 + $0x30] sm:$0xff]   ;;  %v494_v14 = vld [vmem:[%s584_s0 + $0x18] sm:$0xff]  }
   0x6   :  { %v495_v15 = vld [vmem:[%s584_s0 + $0x38] sm:$0xff]  }
   0x7   :  { %435 = vmatpush3.bf16.msra.mxu0 %v481_v1  ;;  %473 = vmatpush3.bf16.msra.mxu1 %v481_v1 }
   0x8   :  { %436 = vmatprep.subr.bf16.mxu0 %v482_v2  ;;  %466 = vmatprep.subr.bf16.mxu1 %v482_v2 }
   0xb   :  { %437 = vmatpush3.bf16.msra.mxu0 %v482_v2  ;;  %474 = vmatpush3.bf16.msra.mxu1 %v482_v2 }
   0xc   :  { %438 = vmatprep.subr.bf16.mxu0 %v483_v3  ;;  %467 = vmatprep.subr.bf16.mxu1 %v483_v3 }
   0xf   :  { %439 = vmatpush3.bf16.msra.mxu0 %v483_v3  ;;  %475 = vmatpush3.bf16.msra.mxu1 %v483_v3 }
  0x10   :  { %440 = vmatprep.subr.bf16.mxu0 %v484_v6  ;;  %468 = vmatprep.subr.bf16.mxu1 %v484_v6 }
  0x13   :  { %441 = vmatpush3.bf16.msra.mxu0 %v484_v6  ;;  %476 = vmatpush3.bf16.msra.mxu1 %v484_v6 }
  0x14   :  { %442 = vmatprep.subr.bf16.mxu0 %v485_v7  ;;  %469 = vmatprep.subr.bf16.mxu1 %v485_v7 }
  0x17   :  { %443 = vmatpush3.bf16.msra.mxu0 %v485_v7  ;;  %477 = vmatpush3.bf16.msra.mxu1 %v485_v7 }
  0x18   :  { %444 = vmatprep.subr.bf16.mxu0 %v486_v8  ;;  %470 = vmatprep.subr.bf16.mxu1 %v486_v8 }
  0x1b   :  { %445 = vmatpush3.bf16.msra.mxu0 %v486_v8  ;;  %478 = vmatpush3.bf16.msra.mxu1 %v486_v8 }
  0x1c   :  { %446 = vmatprep.subr.bf16.mxu0 %v487_v9  ;;  %471 = vmatprep.subr.bf16.mxu1 %v487_v9 }
  0x1f   :  { %447 = vmatpush3.bf16.msra.mxu0 %v487_v9  ;;  %479 = vmatpush3.bf16.msra.mxu1 %v487_v9 }
  0x22   :  { %449 = vmatmul.mubr.bf16.vlgmr.msra.gmra.mrb[0].mxu0 %v490_v10  ;;  %457 = vmatmul.mubr.bf16.vlgmr.msra.gmra.mrb[0].mxu1 %v491_v11 }
  0x23   :  { %452 = vmatprep.mubr.bf16.mxu0 %v492_v12  ;;  %460 = vmatprep.mubr.bf16.mxu1 %v493_v13 }
  0x2a   :  { %453 = vmatmul.mubr.bf16.gmra.mrb[4].mxu0 %v494_v14  ;;  %461 = vmatmul.mubr.bf16.gmra.mrb[4].mxu1 %v495_v15 }
  0xf5   :  { %v450_v16 = vpop.f32.mrb[0].mxu0  ;;  %v458_v17 = vpop.f32.mrb[0].mxu1 }
  0xf6   :  { %v174_v18 = vpop.f32.mrb[1].mxu0  ;;  %v206_v19 = vpop.f32.mrb[1].mxu1 }
  0xf7   :  { %v451_v20 = vpop.f32.mrb[2].mxu0  ;;  %v459_v21 = vpop.f32.mrb[2].mxu1 }
  0xf8   :  { %v377_v22 = vpack.c.bf16 %v451_v20, %v450_v16  ;;  %v397_v23 = vpack.c.bf16 %v459_v21, %v458_v17  ;;  %v177_v24 = vpop.f32.mrb[3].mxu0  ;;  %v209_v25 = vpop.f32.mrb[3].mxu1 }
  0xf9   :  { %v372_v26 = vpack.c.bf16 %v177_v24, %v174_v18  ;;  %v392_v27 = vpack.c.bf16 %v209_v25, %v206_v19 }
  0xfa   :  { %409 = vst [vmem:[%s585_s2 + $0x8] sm:$0xff] %v377_v22   ;;  %413 = vst [vmem:[%s585_s2 + $0x28] sm:$0xff] %v397_v23  }
  0xfb   :  { %373 = vst [vmem:[%s585_s2] sm:$0xff] %v372_v26   ;;  %412 = vst [vmem:[%s585_s2 + $0x20] sm:$0xff] %v392_v27  }
  0xfd   :  { %v454_v28 = vpop.f32.mrb[4].mxu0  ;;  %v462_v29 = vpop.f32.mrb[4].mxu1 }
  0xfe   :  { %v190_v30 = vpop.f32.mrb[5].mxu0  ;;  %v222_v31 = vpop.f32.mrb[5].mxu1 }
  0xff   :  { %v455_v32 = vpop.f32.mrb[6].mxu0  ;;  %v463_v33 = vpop.f32.mrb[6].mxu1 }
 0x100   :  { %v387_v34 = vpack.c.bf16 %v455_v32, %v454_v28  ;;  %v407_v35 = vpack.c.bf16 %v463_v33, %v462_v29  ;;  %v193_v36 = vpop.f32.mrb[7].mxu0  ;;  %v225_v37 = vpop.f32.mrb[7].mxu1 }
 0x101   :  { %v382_v38 = vpack.c.bf16 %v193_v36, %v190_v30  ;;  %v402_v39 = vpack.c.bf16 %v225_v37, %v222_v31 }
 0x102   :  { %411 = vst [vmem:[%s585_s2 + $0x18] sm:$0xff] %v387_v34   ;;  %415 = vst [vmem:[%s585_s2 + $0x38] sm:$0xff] %v407_v35  }
 0x103   :  { %410 = vst [vmem:[%s585_s2 + $0x10] sm:$0xff] %v382_v38   ;;  %414 = vst [vmem:[%s585_s2 + $0x30] sm:$0xff] %v402_v39  }

// kernel: node_classifier_forward.4
= control target key start
LH: loop header
LB: loop body
LE: loop exit
PB: predicated region body
PF: predicated region fallthrough
CT: control target
= control target key end

     0   :  { %v942_v0 = vmov 0.0   ;;  %s1089_s0 = inlined_call_operand.<no memory space> [shape: s32[1,1], index: 0, kind: input, shape index: {}]   ;;  %s1090_s1 = inlined_call_operand.<no memory space> [shape: s32[1], index: 1, kind: input, shape index: {}]   ;;  %s1091_s3 = inlined_call_operand.vmem [shape: bf16[128,128], index: 3, kind: input, shape index: {}]   ;;  %s1092_s4 = inlined_call_operand.vmem [shape: f32[1,128], index: 4, kind: input, shape index: {}]   ;;  %s1093_s5 = inlined_call_operand.vmem [shape: bf16[128,128], index: 5, kind: input, shape index: {}]   ;;  %s1094_s6 = inlined_call_operand.vmem [shape: bf16[128,128], index: 6, kind: output, shape index: {}]   ;;  %s1095_s2 = inlined_call_operand.vmem [shape: bf16[128,128], index: 2, kind: input, shape index: {}]  }
   0x1   :  { %11 = sst [smem:[#allocation4]] %s1089_s0  ;;  %p45_p0 = scmp.lt.s32.totalorder %s1089_s0, 0  ;;  %58 = vst [vmem:[#allocation2] sm:$0xff] %v942_v0  ;;  %59 = vst [vmem:[#allocation2 + $0x8] sm:$0xff] %v942_v0 }
   0x2   :  { %60 = vst [vmem:[#allocation2 + $0x10] sm:$0xff] %v942_v0  ;;  %61 = vst [vmem:[#allocation2 + $0x18] sm:$0xff] %v942_v0  ;;  %p682_p1 = scmp.le.s32.totalorder %s1090_s1, 0 }
   0x3   :  { %62 = vst [vmem:[#allocation2 + $0x20] sm:$0xff] %v942_v0  ;;  %63 = vst [vmem:[#allocation2 + $0x28] sm:$0xff] %v942_v0  ;;  %s1097_s0 = smov (!%p45_p0, %s1089_s0), 0  ;;  %s82_s11 = sld [smem:[#allocation4]] (!%p682_p1) }
   0x4   :  { %64 = vst [vmem:[#allocation2 + $0x30] sm:$0xff] %v942_v0  ;;  %65 = vst [vmem:[#allocation2 + $0x38] sm:$0xff] %v942_v0  ;;  %s680_s29 = sshll.u32 %s1097_s0, 2  ;;  %78 = sbr.rel (%p682_p1) target bundleno = 272 (0x110), region = 25 }
   0x5   :  { %66 = vst [vmem:[#allocation2 + $0x40] sm:$0xff] %v942_v0  ;;  %67 = vst [vmem:[#allocation2 + $0x48] sm:$0xff] %v942_v0  ;;  %s994_s8 = scalar_lea.vmem %s1095_s2, %s680_s29 }
   0x6   :  { %68 = vst [vmem:[#allocation2 + $0x50] sm:$0xff] %v942_v0  ;;  %69 = vst [vmem:[#allocation2 + $0x58] sm:$0xff] %v942_v0  ;;  %v926_v1 = vld [vmem:[%s994_s8] sm:$0xff] (!%p682_p1)   ;;  %v928_v11 = vld [vmem:[%s994_s8 + $0x8] sm:$0xff] (!%p682_p1)  }
   0x7   :  { %70 = vst [vmem:[#allocation2 + $0x60] sm:$0xff] %v942_v0  ;;  %71 = vst [vmem:[#allocation2 + $0x68] sm:$0xff] %v942_v0  ;;  %v927_v2 = vld [vmem:[%s994_s8 + $0x20] sm:$0xff] (!%p682_p1)   ;;  %837 = vmatprep.mubr.bf16.mxu0 (!%p682_p1), %v926_v1  ;;  %v929_v12 = vld [vmem:[%s994_s8 + $0x28] sm:$0xff] (!%p682_p1)  }
   0x8   :  { %72 = vst [vmem:[#allocation2 + $0x70] sm:$0xff] %v942_v0  ;;  %73 = vst [vmem:[#allocation2 + $0x78] sm:$0xff] %v942_v0  ;;  %845 = vmatprep.mubr.bf16.mxu1 (!%p682_p1), %v927_v2  ;;  %v930_v13 = vld [vmem:[%s994_s8 + $0x10] sm:$0xff] (!%p682_p1)   ;;  %v932_v15 = vld [vmem:[%s994_s8 + $0x18] sm:$0xff] (!%p682_p1)  }
   0x9   :  { %s683_s12 = sshll.u32 (!%p682_p1), %s82_s11, 7  ;;  %v931_v14 = vld [vmem:[%s994_s8 + $0x30] sm:$0xff] (!%p682_p1)   ;;  %v933_v16 = vld [vmem:[%s994_s8 + $0x38] sm:$0xff] (!%p682_p1)   ;;  %v104_v19 = vld [vmem:[#allocation2] sm:$0xff] (!%p682_p1) }
   0xa   :  { %s84_s13 = sshra.s32 (!%p682_p1), %s683_s12, 3  ;;  %v106_v17 = vld [vmem:[#allocation2 + $0x10] sm:$0xff] (!%p682_p1)  ;;  %v107_v23 = vld [vmem:[#allocation2 + $0x18] sm:$0xff] (!%p682_p1)  ;;  %v105_v29 = vld [vmem:[#allocation2 + $0x8] sm:$0xff] (!%p682_p1) }
   0xb   :  { %s684_s0 = sshll.u32 %s84_s13, 2  ;;  %v110_v41 = vld [vmem:[#allocation2 + $0x30] sm:$0xff]  ;;  %v108_v43 = vld [vmem:[#allocation2 + $0x20] sm:$0xff]  ;;  %v111_v47 = vld [vmem:[#allocation2 + $0x38] sm:$0xff] }
   0xc   :  { %s1004_s2 = scalar_lea.vmem %s1091_s3, %s684_s0  ;;  %v112_v20 = vld [vmem:[#allocation2 + $0x40] sm:$0xff]  ;;  %v113_v30 = vld [vmem:[#allocation2 + $0x48] sm:$0xff] }
   0xd   :  { %v918_v3 = vld [vmem:[%s1004_s2] sm:$0xff]   ;;  %v919_v4 = vld [vmem:[%s1004_s2 + $0x8] sm:$0xff]   ;;  %v920_v5 = vld [vmem:[%s1004_s2 + $0x10] sm:$0xff]  }
   0xe   :  { %821 = vmatprep.subr.bf16.mxu0 %v918_v3  ;;  %885 = vmatprep.subr.bf16.mxu1 %v918_v3  ;;  %v921_v6 = vld [vmem:[%s1004_s2 + $0x18] sm:$0xff]   ;;  %v922_v7 = vld [vmem:[%s1004_s2 + $0x20] sm:$0xff]   ;;  %v923_v8 = vld [vmem:[%s1004_s2 + $0x28] sm:$0xff]  }
   0xf   :  { %822 = vmatpush3.bf16.msra.mxu0 %v918_v3  ;;  %893 = vmatpush3.bf16.msra.mxu1 %v918_v3  ;;  %v924_v9 = vld [vmem:[%s1004_s2 + $0x30] sm:$0xff]   ;;  %v925_v10 = vld [vmem:[%s1004_s2 + $0x38] sm:$0xff]   ;;  %v116_v44 = vld [vmem:[#allocation2 + $0x60] sm:$0xff] }
  0x10   :  { %823 = vmatprep.subr.bf16.mxu0 %v919_v4  ;;  %886 = vmatprep.subr.bf16.mxu1 %v919_v4  ;;  %v114_v18 = vld [vmem:[#allocation2 + $0x50] sm:$0xff]  ;;  %v115_v24 = vld [vmem:[#allocation2 + $0x58] sm:$0xff]  ;;  %v109_v53 = vld [vmem:[#allocation2 + $0x28] sm:$0xff] }
  0x11   :  { %v118_v42 = vld [vmem:[#allocation2 + $0x70] sm:$0xff]  ;;  %v119_v48 = vld [vmem:[#allocation2 + $0x78] sm:$0xff]  ;;  %v117_v54 = vld [vmem:[#allocation2 + $0x68] sm:$0xff] }
  0x13   :  { %824 = vmatpush3.bf16.msra.mxu0 %v919_v4  ;;  %894 = vmatpush3.bf16.msra.mxu1 %v919_v4 }
  0x14   :  { %825 = vmatprep.subr.bf16.mxu0 %v920_v5  ;;  %887 = vmatprep.subr.bf16.mxu1 %v920_v5 }
  0x17   :  { %826 = vmatpush3.bf16.msra.mxu0 %v920_v5  ;;  %895 = vmatpush3.bf16.msra.mxu1 %v920_v5 }
  0x18   :  { %827 = vmatprep.subr.bf16.mxu0 %v921_v6  ;;  %888 = vmatprep.subr.bf16.mxu1 %v921_v6 }
  0x1b   :  { %828 = vmatpush3.bf16.msra.mxu0 %v921_v6  ;;  %896 = vmatpush3.bf16.msra.mxu1 %v921_v6 }
  0x1c   :  { %829 = vmatprep.subr.bf16.mxu0 %v922_v7  ;;  %889 = vmatprep.subr.bf16.mxu1 %v922_v7 }
  0x1f   :  { %830 = vmatpush3.bf16.msra.mxu0 %v922_v7  ;;  %897 = vmatpush3.bf16.msra.mxu1 %v922_v7 }
  0x20   :  { %831 = vmatprep.subr.bf16.mxu0 %v923_v8  ;;  %890 = vmatprep.subr.bf16.mxu1 %v923_v8 }
  0x23   :  { %832 = vmatpush3.bf16.msra.mxu0 %v923_v8  ;;  %898 = vmatpush3.bf16.msra.mxu1 %v923_v8 }
  0x24   :  { %833 = vmatprep.subr.bf16.mxu0 %v924_v9  ;;  %891 = vmatprep.subr.bf16.mxu1 %v924_v9 }
  0x27   :  { %834 = vmatpush3.bf16.msra.mxu0 %v924_v9  ;;  %899 = vmatpush3.bf16.msra.mxu1 %v924_v9 }
  0x28   :  { %835 = vmatprep.subr.bf16.mxu0 %v925_v10  ;;  %892 = vmatprep.subr.bf16.mxu1 %v925_v10 }
  0x2b   :  { %836 = vmatpush3.bf16.msra.mxu0 %v925_v10  ;;  %900 = vmatpush3.bf16.msra.mxu1 %v925_v10 }
  0x2e   :  { %838 = vmatmul.mubr.bf16.vlgmr.msra.gmra.mrb[0].mxu0 %v928_v11  ;;  %846 = vmatmul.mubr.bf16.vlgmr.msra.gmra.mrb[0].mxu1 %v929_v12 }
  0x2f   :  { %841 = vmatprep.mubr.bf16.mxu0 %v930_v13  ;;  %849 = vmatprep.mubr.bf16.mxu1 %v931_v14 }
  0x36   :  { %842 = vmatmul.mubr.bf16.gmra.mrb[4].mxu0 %v932_v15  ;;  %850 = vmatmul.mubr.bf16.gmra.mrb[4].mxu1 %v933_v16 }
 0x101   :  { %v839_v21 = vpop.f32.mrb[0].mxu0  ;;  %v847_v22 = vpop.f32.mrb[0].mxu1 }
 0x102   :  { %v331_v25 = vadd.f32 %v839_v21, %v106_v17  ;;  %v339_v26 = vadd.f32 %v847_v22, %v114_v18  ;;  %v266_v27 = vpop.f32.mrb[1].mxu0  ;;  %v298_v28 = vpop.f32.mrb[1].mxu1 }
 0x103   :  { %v329_v31 = vadd.f32 %v266_v27, %v104_v19  ;;  %v337_v32 = vadd.f32 %v298_v28, %v112_v20  ;;  %v840_v33 = vpop.f32.mrb[2].mxu0  ;;  %v848_v34 = vpop.f32.mrb[2].mxu1 }
 0x104   :  { %347 = vst [vmem:[#allocation2 + $0x10] sm:$0xff] %v331_v25  ;;  %355 = vst [vmem:[#allocation2 + $0x50] sm:$0xff] %v339_v26  ;;  %v332_v35 = vadd.f32 %v840_v33, %v107_v23  ;;  %v340_v36 = vadd.f32 %v848_v34, %v115_v24  ;;  %v269_v37 = vpop.f32.mrb[3].mxu0  ;;  %v301_v38 = vpop.f32.mrb[3].mxu1 }
 0x105   :  { %345 = vst [vmem:[#allocation2] sm:$0xff] %v329_v31  ;;  %353 = vst [vmem:[#allocation2 + $0x40] sm:$0xff] %v337_v32  ;;  %v330_v39 = vadd.f32 %v269_v37, %v105_v29  ;;  %v338_v40 = vadd.f32 %v301_v38, %v113_v30 }
 0x106   :  { %348 = vst [vmem:[#allocation2 + $0x18] sm:$0xff] %v332_v35  ;;  %356 = vst [vmem:[#allocation2 + $0x58] sm:$0xff] %v340_v36 }
 0x107   :  { %346 = vst [vmem:[#allocation2 + $0x8] sm:$0xff] %v330_v39  ;;  %354 = vst [vmem:[#allocation2 + $0x48] sm:$0xff] %v338_v40 }
 0x109   :  { %v843_v45 = vpop.f32.mrb[4].mxu0  ;;  %v851_v46 = vpop.f32.mrb[4].mxu1 }
 0x10a   :  { %v335_v49 = vadd.f32 %v843_v45, %v110_v41  ;;  %v343_v50 = vadd.f32 %v851_v46, %v118_v42  ;;  %v282_v51 = vpop.f32.mrb[5].mxu0  ;;  %v314_v52 = vpop.f32.mrb[5].mxu1 }
 0x10b   :  { %v333_v55 = vadd.f32 %v282_v51, %v108_v43  ;;  %v341_v56 = vadd.f32 %v314_v52, %v116_v44  ;;  %v844_v57 = vpop.f32.mrb[6].mxu0  ;;  %v852_v58 = vpop.f32.mrb[6].mxu1 }
 0x10c   :  { %351 = vst [vmem:[#allocation2 + $0x30] sm:$0xff] %v335_v49  ;;  %359 = vst [vmem:[#allocation2 + $0x70] sm:$0xff] %v343_v50  ;;  %v336_v59 = vadd.f32 %v844_v57, %v111_v47  ;;  %v344_v60 = vadd.f32 %v852_v58, %v119_v48  ;;  %v285_v61 = vpop.f32.mrb[7].mxu0  ;;  %v317_v62 = vpop.f32.mrb[7].mxu1 }
 0x10d   :  { %349 = vst [vmem:[#allocation2 + $0x20] sm:$0xff] %v333_v55  ;;  %357 = vst [vmem:[#allocation2 + $0x60] sm:$0xff] %v341_v56  ;;  %v334_v63 = vadd.f32 %v285_v61, %v109_v53  ;;  %v342_v0 = vadd.f32 %v317_v62, %v117_v54 }
 0x10e   :  { %352 = vst [vmem:[#allocation2 + $0x38] sm:$0xff] %v336_v59  ;;  %360 = vst [vmem:[#allocation2 + $0x78] sm:$0xff] %v344_v60 }
 0x10f   :  { %350 = vst [vmem:[#allocation2 + $0x28] sm:$0xff] %v334_v63  ;;  %358 = vst [vmem:[#allocation2 + $0x68] sm:$0xff] %v342_v0 }
 0x110 PF:  { %v934_v1 = vld [vmem:[%s1093_s5] sm:$0xff]   ;;  %v935_v2 = vld [vmem:[%s1093_s5 + $0x8] sm:$0xff]   ;;  %v936_v3 = vld [vmem:[%s1093_s5 + $0x10] sm:$0xff]  }
 0x111   :  { %853 = vmatprep.subr.bf16.mxu0 %v934_v1  ;;  %901 = vmatprep.subr.bf16.mxu1 %v934_v1  ;;  %v937_v4 = vld [vmem:[%s1093_s5 + $0x18] sm:$0xff]   ;;  %v364_v5 = vld [vmem:[#allocation2] sm:$0xff]  ;;  %v365_v6 = vld [vmem:[#allocation2 + $0x8] sm:$0xff] }
 0x112   :  { %854 = vmatpush3.bf16.msra.mxu0 %v934_v1  ;;  %909 = vmatpush3.bf16.msra.mxu1 %v934_v1  ;;  %v1035_v7 = vld [vmem:[%s1092_s4] ss:$0 sm:$0xff]  ;;  %v373_v11 = vld [vmem:[#allocation2 + $0x48] sm:$0xff]  ;;  %v940_v22 = vld [vmem:[%s1093_s5 + $0x30] sm:$0xff]  }
 0x113   :  { %855 = vmatprep.subr.bf16.mxu0 %v935_v2  ;;  %902 = vmatprep.subr.bf16.mxu1 %v935_v2  ;;  %v387_v8 = vadd.f32 %v1035_v7, %v364_v5  ;;  %v388_v9 = vadd.f32 %v1035_v7, %v365_v6  ;;  %v372_v10 = vld [vmem:[#allocation2 + $0x40] sm:$0xff]  ;;  %v396_v13 = vadd.f32 %v1035_v7, %v373_v11  ;;  %v939_v21 = vld [vmem:[%s1093_s5 + $0x28] sm:$0xff]   ;;  %v366_v23 = vld [vmem:[#allocation2 + $0x10] sm:$0xff] }
 0x114   :  { %v395_v12 = vadd.f32 %v1035_v7, %v372_v10  ;;  %v938_v16 = vld [vmem:[%s1093_s5 + $0x20] sm:$0xff]   ;;  %v367_v24 = vld [vmem:[#allocation2 + $0x18] sm:$0xff]  ;;  %v374_v25 = vld [vmem:[#allocation2 + $0x50] sm:$0xff]  ;;  %v389_v31 = vadd.f32 %v1035_v7, %v366_v23 }
 0x115   :  { %v403_v14 = vmax.f32 %v387_v8, 0.0  ;;  %v404_v15 = vmax.f32 %v388_v9, 0.0  ;;  %v412_v18 = vmax.f32 %v396_v13, 0.0  ;;  %v375_v26 = vld [vmem:[#allocation2 + $0x58] sm:$0xff]  ;;  %v368_v27 = vld [vmem:[#allocation2 + $0x20] sm:$0xff]  ;;  %v390_v32 = vadd.f32 %v1035_v7, %v367_v24  ;;  %v370_v44 = vld [vmem:[#allocation2 + $0x30] sm:$0xff] }
 0x116   :  { %856 = vmatpush3.bf16.msra.mxu0 %v935_v2  ;;  %910 = vmatpush3.bf16.msra.mxu1 %v935_v2  ;;  %v411_v17 = vmax.f32 %v395_v12, 0.0  ;;  %v369_v28 = vld [vmem:[#allocation2 + $0x28] sm:$0xff]  ;;  %v376_v29 = vld [vmem:[#allocation2 + $0x60] sm:$0xff]  ;;  %v397_v33 = vadd.f32 %v1035_v7, %v374_v25  ;;  %v398_v34 = vadd.f32 %v1035_v7, %v375_v26  ;;  %v391_v35 = vadd.f32 %v1035_v7, %v368_v27  ;;  %v941_v39 = vld [vmem:[%s1093_s5 + $0x38] sm:$0xff]  }
 0x117   :  { %857 = vmatprep.subr.bf16.mxu0 %v936_v3  ;;  %903 = vmatprep.subr.bf16.mxu1 %v936_v3  ;;  %v419_v19 = vpack.c.bf16 %v404_v15, %v403_v14  ;;  %v377_v30 = vld [vmem:[#allocation2 + $0x68] sm:$0xff]  ;;  %v392_v36 = vadd.f32 %v1035_v7, %v369_v28  ;;  %v399_v37 = vadd.f32 %v1035_v7, %v376_v29  ;;  %v405_v40 = vmax.f32 %v389_v31, 0.0  ;;  %v371_v45 = vld [vmem:[#allocation2 + $0x38] sm:$0xff]  ;;  %v378_v50 = vld [vmem:[#allocation2 + $0x70] sm:$0xff] }
 0x118   :  { %v423_v20 = vpack.c.bf16 %v412_v18, %v411_v17  ;;  %v400_v38 = vadd.f32 %v1035_v7, %v377_v30  ;;  %v406_v41 = vmax.f32 %v390_v32, 0.0  ;;  %v413_v42 = vmax.f32 %v397_v33, 0.0  ;;  %v379_v51 = vld [vmem:[#allocation2 + $0x78] sm:$0xff] }
 0x119   :  { %869 = vmatprep.mubr.bf16.mxu0 %v419_v19  ;;  %v414_v43 = vmax.f32 %v398_v34, 0.0  ;;  %v407_v46 = vmax.f32 %v391_v35, 0.0  ;;  %v408_v47 = vmax.f32 %v392_v36, 0.0  ;;  %v415_v48 = vmax.f32 %v399_v37, 0.0 }
 0x11a   :  { %858 = vmatpush3.bf16.msra.mxu0 %v936_v3  ;;  %911 = vmatpush3.bf16.msra.mxu1 %v936_v3  ;;  %v416_v49 = vmax.f32 %v400_v38, 0.0  ;;  %v420_v52 = vpack.c.bf16 %v406_v41, %v405_v40  ;;  %v393_v53 = vadd.f32 %v1035_v7, %v370_v44  ;;  %v394_v55 = vadd.f32 %v1035_v7, %v371_v45 }
 0x11b   :  { %859 = vmatprep.subr.bf16.mxu0 %v937_v4  ;;  %904 = vmatprep.subr.bf16.mxu1 %v937_v4  ;;  %v424_v54 = vpack.c.bf16 %v414_v43, %v413_v42  ;;  %v401_v56 = vadd.f32 %v1035_v7, %v378_v50  ;;  %v402_v57 = vadd.f32 %v1035_v7, %v379_v51 }
 0x11c   :  { %877 = vmatprep.mubr.bf16.mxu1 %v423_v20  ;;  %v421_v58 = vpack.c.bf16 %v408_v47, %v407_v46  ;;  %v425_v59 = vpack.c.bf16 %v416_v49, %v415_v48  ;;  %v409_v60 = vmax.f32 %v393_v53, 0.0  ;;  %v410_v61 = vmax.f32 %v394_v55, 0.0 }
 0x11d   :  { %v417_v62 = vmax.f32 %v401_v56, 0.0  ;;  %v418_v63 = vmax.f32 %v402_v57, 0.0 }
 0x11e   :  { %860 = vmatpush3.bf16.msra.mxu0 %v937_v4  ;;  %912 = vmatpush3.bf16.msra.mxu1 %v937_v4  ;;  %v422_v0 = vpack.c.bf16 %v410_v61, %v409_v60 }
 0x11f   :  { %861 = vmatprep.subr.bf16.mxu0 %v938_v16  ;;  %905 = vmatprep.subr.bf16.mxu1 %v938_v16  ;;  %v426_v1 = vpack.c.bf16 %v418_v63, %v417_v62 }
 0x122   :  { %862 = vmatpush3.bf16.msra.mxu0 %v938_v16  ;;  %913 = vmatpush3.bf16.msra.mxu1 %v938_v16 }
 0x123   :  { %863 = vmatprep.subr.bf16.mxu0 %v939_v21  ;;  %906 = vmatprep.subr.bf16.mxu1 %v939_v21 }
 0x126   :  { %864 = vmatpush3.bf16.msra.mxu0 %v939_v21  ;;  %914 = vmatpush3.bf16.msra.mxu1 %v939_v21 }
 0x127   :  { %865 = vmatprep.subr.bf16.mxu0 %v940_v22  ;;  %907 = vmatprep.subr.bf16.mxu1 %v940_v22 }
 0x12a   :  { %866 = vmatpush3.bf16.msra.mxu0 %v940_v22  ;;  %915 = vmatpush3.bf16.msra.mxu1 %v940_v22 }
 0x12b   :  { %867 = vmatprep.subr.bf16.mxu0 %v941_v39  ;;  %908 = vmatprep.subr.bf16.mxu1 %v941_v39 }
 0x12e   :  { %868 = vmatpush3.bf16.msra.mxu0 %v941_v39  ;;  %916 = vmatpush3.bf16.msra.mxu1 %v941_v39 }
 0x131   :  { %870 = vmatmul.mubr.bf16.vlgmr.msra.gmra.mrb[0].mxu0 %v420_v52  ;;  %878 = vmatmul.mubr.bf16.vlgmr.msra.gmra.mrb[0].mxu1 %v424_v54 }
 0x132   :  { %873 = vmatprep.mubr.bf16.mxu0 %v421_v58  ;;  %881 = vmatprep.mubr.bf16.mxu1 %v425_v59 }
 0x139   :  { %874 = vmatmul.mubr.bf16.gmra.mrb[4].mxu0 %v422_v0  ;;  %882 = vmatmul.mubr.bf16.gmra.mrb[4].mxu1 %v426_v1 }
 0x204   :  { %v871_v2 = vpop.f32.mrb[0].mxu0  ;;  %v879_v3 = vpop.f32.mrb[0].mxu1 }
 0x205   :  { %v525_v4 = vpop.f32.mrb[1].mxu0  ;;  %v557_v5 = vpop.f32.mrb[1].mxu1 }
 0x206   :  { %v872_v6 = vpop.f32.mrb[2].mxu0  ;;  %v880_v7 = vpop.f32.mrb[2].mxu1 }
 0x207   :  { %v750_v8 = vpack.c.bf16 %v872_v6, %v871_v2  ;;  %v770_v9 = vpack.c.bf16 %v880_v7, %v879_v3  ;;  %v528_v10 = vpop.f32.mrb[3].mxu0  ;;  %v560_v11 = vpop.f32.mrb[3].mxu1 }
 0x208   :  { %v745_v12 = vpack.c.bf16 %v528_v10, %v525_v4  ;;  %v765_v13 = vpack.c.bf16 %v560_v11, %v557_v5 }
 0x209   :  { %782 = vst [vmem:[%s1094_s6 + $0x8] sm:$0xff] %v750_v8   ;;  %786 = vst [vmem:[%s1094_s6 + $0x28] sm:$0xff] %v770_v9  }
 0x20a   :  { %746 = vst [vmem:[%s1094_s6] sm:$0xff] %v745_v12   ;;  %785 = vst [vmem:[%s1094_s6 + $0x20] sm:$0xff] %v765_v13  }
 0x20c   :  { %v875_v14 = vpop.f32.mrb[4].mxu0  ;;  %v883_v15 = vpop.f32.mrb[4].mxu1 }
 0x20d   :  { %v541_v16 = vpop.f32.mrb[5].mxu0  ;;  %v573_v17 = vpop.f32.mrb[5].mxu1 }
 0x20e   :  { %v876_v18 = vpop.f32.mrb[6].mxu0  ;;  %v884_v19 = vpop.f32.mrb[6].mxu1 }
 0x20f   :  { %v760_v20 = vpack.c.bf16 %v876_v18, %v875_v14  ;;  %v780_v21 = vpack.c.bf16 %v884_v19, %v883_v15  ;;  %v544_v22 = vpop.f32.mrb[7].mxu0  ;;  %v576_v23 = vpop.f32.mrb[7].mxu1 }
 0x210   :  { %v755_v24 = vpack.c.bf16 %v544_v22, %v541_v16  ;;  %v775_v25 = vpack.c.bf16 %v576_v23, %v573_v17 }
 0x211   :  { %784 = vst [vmem:[%s1094_s6 + $0x18] sm:$0xff] %v760_v20   ;;  %788 = vst [vmem:[%s1094_s6 + $0x38] sm:$0xff] %v780_v21  }
 0x212   :  { %783 = vst [vmem:[%s1094_s6 + $0x10] sm:$0xff] %v755_v24   ;;  %787 = vst [vmem:[%s1094_s6 + $0x30] sm:$0xff] %v775_v25  }

// kernel: node_classifier_forward.5
= control target key start
LH: loop header
LB: loop body
LE: loop exit
PB: predicated region body
PF: predicated region fallthrough
CT: control target
= control target key end

     0   :  { %v1053_v0 = vmov 0.0   ;;  %s1347_s0 = inlined_call_operand.<no memory space> [shape: s32[1,1], index: 0, kind: input, shape index: {}]   ;;  %s1348_s1 = inlined_call_operand.<no memory space> [shape: s32[1], index: 1, kind: input, shape index: {}]   ;;  %s1349_s3 = inlined_call_operand.vmem [shape: bf16[128,128], index: 3, kind: input, shape index: {}]   ;;  %s1350_s4 = inlined_call_operand.vmem [shape: f32[1,128], index: 4, kind: input, shape index: {}]   ;;  %s1351_s5 = inlined_call_operand.vmem [shape: bf16[128,128], index: 5, kind: input, shape index: {}]   ;;  %s1352_s6 = inlined_call_operand.vmem [shape: f32[1,128], index: 6, kind: input, shape index: {}]   ;;  %s1353_s7 = inlined_call_operand.vmem [shape: f32[128,128], index: 7, kind: output, shape index: {}]   ;;  %s1354_s2 = inlined_call_operand.vmem [shape: bf16[128,128], index: 2, kind: input, shape index: {}]  }
   0x1   :  { %12 = sst [smem:[#allocation4]] %s1347_s0  ;;  %p48_p0 = scmp.lt.s32.totalorder %s1347_s0, 0  ;;  %61 = vst [vmem:[#allocation2] sm:$0xff] %v1053_v0  ;;  %62 = vst [vmem:[#allocation2 + $0x8] sm:$0xff] %v1053_v0 }
   0x2   :  { %63 = vst [vmem:[#allocation2 + $0x10] sm:$0xff] %v1053_v0  ;;  %64 = vst [vmem:[#allocation2 + $0x18] sm:$0xff] %v1053_v0  ;;  %p807_p1 = scmp.le.s32.totalorder %s1348_s1, 0 }
   0x3   :  { %65 = vst [vmem:[#allocation2 + $0x20] sm:$0xff] %v1053_v0  ;;  %66 = vst [vmem:[#allocation2 + $0x28] sm:$0xff] %v1053_v0  ;;  %s1356_s0 = smov (!%p48_p0, %s1347_s0), 0  ;;  %s85_s15 = sld [smem:[#allocation4]] (!%p807_p1) }
   0x4   :  { %67 = vst [vmem:[#allocation2 + $0x30] sm:$0xff] %v1053_v0  ;;  %68 = vst [vmem:[#allocation2 + $0x38] sm:$0xff] %v1053_v0  ;;  %s805_s9 = sshll.u32 %s1356_s0, 2  ;;  %81 = sbr.rel (%p807_p1) target bundleno = 272 (0x110), region = 29 }
   0x5   :  { %69 = vst [vmem:[#allocation2 + $0x40] sm:$0xff] %v1053_v0  ;;  %70 = vst [vmem:[#allocation2 + $0x48] sm:$0xff] %v1053_v0  ;;  %s1110_s12 = scalar_lea.vmem %s1354_s2, %s805_s9 }
   0x6   :  { %71 = vst [vmem:[#allocation2 + $0x50] sm:$0xff] %v1053_v0  ;;  %72 = vst [vmem:[#allocation2 + $0x58] sm:$0xff] %v1053_v0  ;;  %v973_v1 = vld [vmem:[%s1110_s12] sm:$0xff] (!%p807_p1)   ;;  %v975_v11 = vld [vmem:[%s1110_s12 + $0x8] sm:$0xff] (!%p807_p1)  }
   0x7   :  { %73 = vst [vmem:[#allocation2 + $0x60] sm:$0xff] %v1053_v0  ;;  %74 = vst [vmem:[#allocation2 + $0x68] sm:$0xff] %v1053_v0  ;;  %v974_v2 = vld [vmem:[%s1110_s12 + $0x20] sm:$0xff] (!%p807_p1)   ;;  %884 = vmatprep.mubr.bf16.mxu0 (!%p807_p1), %v973_v1  ;;  %v976_v12 = vld [vmem:[%s1110_s12 + $0x28] sm:$0xff] (!%p807_p1)  }
   0x8   :  { %75 = vst [vmem:[#allocation2 + $0x70] sm:$0xff] %v1053_v0  ;;  %76 = vst [vmem:[#allocation2 + $0x78] sm:$0xff] %v1053_v0  ;;  %892 = vmatprep.mubr.bf16.mxu1 (!%p807_p1), %v974_v2  ;;  %v977_v13 = vld [vmem:[%s1110_s12 + $0x10] sm:$0xff] (!%p807_p1)   ;;  %v979_v15 = vld [vmem:[%s1110_s12 + $0x18] sm:$0xff] (!%p807_p1)  }
   0x9   :  { %s808_s16 = sshll.u32 (!%p807_p1), %s85_s15, 7  ;;  %v978_v14 = vld [vmem:[%s1110_s12 + $0x30] sm:$0xff] (!%p807_p1)   ;;  %v980_v16 = vld [vmem:[%s1110_s12 + $0x38] sm:$0xff] (!%p807_p1)   ;;  %v107_v19 = vld [vmem:[#allocation2] sm:$0xff] (!%p807_p1) }
   0xa   :  { %s87_s17 = sshra.s32 (!%p807_p1), %s808_s16, 3  ;;  %v109_v17 = vld [vmem:[#allocation2 + $0x10] sm:$0xff] (!%p807_p1)  ;;  %v110_v23 = vld [vmem:[#allocation2 + $0x18] sm:$0xff] (!%p807_p1)  ;;  %v108_v29 = vld [vmem:[#allocation2 + $0x8] sm:$0xff] (!%p807_p1) }
   0xb   :  { %s809_s0 = sshll.u32 %s87_s17, 2  ;;  %v113_v41 = vld [vmem:[#allocation2 + $0x30] sm:$0xff]  ;;  %v111_v43 = vld [vmem:[#allocation2 + $0x20] sm:$0xff]  ;;  %v114_v47 = vld [vmem:[#allocation2 + $0x38] sm:$0xff] }
   0xc   :  { %s1120_s2 = scalar_lea.vmem %s1349_s3, %s809_s0  ;;  %v115_v20 = vld [vmem:[#allocation2 + $0x40] sm:$0xff]  ;;  %v116_v30 = vld [vmem:[#allocation2 + $0x48] sm:$0xff] }
   0xd   :  { %v965_v3 = vld [vmem:[%s1120_s2] sm:$0xff]   ;;  %v966_v4 = vld [vmem:[%s1120_s2 + $0x8] sm:$0xff]   ;;  %v967_v5 = vld [vmem:[%s1120_s2 + $0x10] sm:$0xff]  }
   0xe   :  { %868 = vmatprep.subr.bf16.mxu0 %v965_v3  ;;  %932 = vmatprep.subr.bf16.mxu1 %v965_v3  ;;  %v968_v6 = vld [vmem:[%s1120_s2 + $0x18] sm:$0xff]   ;;  %v969_v7 = vld [vmem:[%s1120_s2 + $0x20] sm:$0xff]   ;;  %v970_v8 = vld [vmem:[%s1120_s2 + $0x28] sm:$0xff]  }
   0xf   :  { %869 = vmatpush3.bf16.msra.mxu0 %v965_v3  ;;  %940 = vmatpush3.bf16.msra.mxu1 %v965_v3  ;;  %v971_v9 = vld [vmem:[%s1120_s2 + $0x30] sm:$0xff]   ;;  %v972_v10 = vld [vmem:[%s1120_s2 + $0x38] sm:$0xff]   ;;  %v119_v44 = vld [vmem:[#allocation2 + $0x60] sm:$0xff] }
  0x10   :  { %870 = vmatprep.subr.bf16.mxu0 %v966_v4  ;;  %933 = vmatprep.subr.bf16.mxu1 %v966_v4  ;;  %v117_v18 = vld [vmem:[#allocation2 + $0x50] sm:$0xff]  ;;  %v118_v24 = vld [vmem:[#allocation2 + $0x58] sm:$0xff]  ;;  %v112_v53 = vld [vmem:[#allocation2 + $0x28] sm:$0xff] }
  0x11   :  { %v121_v42 = vld [vmem:[#allocation2 + $0x70] sm:$0xff]  ;;  %v122_v48 = vld [vmem:[#allocation2 + $0x78] sm:$0xff]  ;;  %v120_v54 = vld [vmem:[#allocation2 + $0x68] sm:$0xff] }
  0x13   :  { %871 = vmatpush3.bf16.msra.mxu0 %v966_v4  ;;  %941 = vmatpush3.bf16.msra.mxu1 %v966_v4 }
  0x14   :  { %872 = vmatprep.subr.bf16.mxu0 %v967_v5  ;;  %934 = vmatprep.subr.bf16.mxu1 %v967_v5 }
  0x17   :  { %873 = vmatpush3.bf16.msra.mxu0 %v967_v5  ;;  %942 = vmatpush3.bf16.msra.mxu1 %v967_v5 }
  0x18   :  { %874 = vmatprep.subr.bf16.mxu0 %v968_v6  ;;  %935 = vmatprep.subr.bf16.mxu1 %v968_v6 }
  0x1b   :  { %875 = vmatpush3.bf16.msra.mxu0 %v968_v6  ;;  %943 = vmatpush3.bf16.msra.mxu1 %v968_v6 }
  0x1c   :  { %876 = vmatprep.subr.bf16.mxu0 %v969_v7  ;;  %936 = vmatprep.subr.bf16.mxu1 %v969_v7 }
  0x1f   :  { %877 = vmatpush3.bf16.msra.mxu0 %v969_v7  ;;  %944 = vmatpush3.bf16.msra.mxu1 %v969_v7 }
  0x20   :  { %878 = vmatprep.subr.bf16.mxu0 %v970_v8  ;;  %937 = vmatprep.subr.bf16.mxu1 %v970_v8 }
  0x23   :  { %879 = vmatpush3.bf16.msra.mxu0 %v970_v8  ;;  %945 = vmatpush3.bf16.msra.mxu1 %v970_v8 }
  0x24   :  { %880 = vmatprep.subr.bf16.mxu0 %v971_v9  ;;  %938 = vmatprep.subr.bf16.mxu1 %v971_v9 }
  0x27   :  { %881 = vmatpush3.bf16.msra.mxu0 %v971_v9  ;;  %946 = vmatpush3.bf16.msra.mxu1 %v971_v9 }
  0x28   :  { %882 = vmatprep.subr.bf16.mxu0 %v972_v10  ;;  %939 = vmatprep.subr.bf16.mxu1 %v972_v10 }
  0x2b   :  { %883 = vmatpush3.bf16.msra.mxu0 %v972_v10  ;;  %947 = vmatpush3.bf16.msra.mxu1 %v972_v10 }
  0x2e   :  { %885 = vmatmul.mubr.bf16.vlgmr.msra.gmra.mrb[0].mxu0 %v975_v11  ;;  %893 = vmatmul.mubr.bf16.vlgmr.msra.gmra.mrb[0].mxu1 %v976_v12 }
  0x2f   :  { %888 = vmatprep.mubr.bf16.mxu0 %v977_v13  ;;  %896 = vmatprep.mubr.bf16.mxu1 %v978_v14 }
  0x36   :  { %889 = vmatmul.mubr.bf16.gmra.mrb[4].mxu0 %v979_v15  ;;  %897 = vmatmul.mubr.bf16.gmra.mrb[4].mxu1 %v980_v16 }
 0x101   :  { %v886_v21 = vpop.f32.mrb[0].mxu0  ;;  %v894_v22 = vpop.f32.mrb[0].mxu1 }
 0x102   :  { %v334_v25 = vadd.f32 %v886_v21, %v109_v17  ;;  %v342_v26 = vadd.f32 %v894_v22, %v117_v18  ;;  %v269_v27 = vpop.f32.mrb[1].mxu0  ;;  %v301_v28 = vpop.f32.mrb[1].mxu1 }
 0x103   :  { %v332_v31 = vadd.f32 %v269_v27, %v107_v19  ;;  %v340_v32 = vadd.f32 %v301_v28, %v115_v20  ;;  %v887_v33 = vpop.f32.mrb[2].mxu0  ;;  %v895_v34 = vpop.f32.mrb[2].mxu1 }
 0x104   :  { %350 = vst [vmem:[#allocation2 + $0x10] sm:$0xff] %v334_v25  ;;  %358 = vst [vmem:[#allocation2 + $0x50] sm:$0xff] %v342_v26  ;;  %v335_v35 = vadd.f32 %v887_v33, %v110_v23  ;;  %v343_v36 = vadd.f32 %v895_v34, %v118_v24  ;;  %v272_v37 = vpop.f32.mrb[3].mxu0  ;;  %v304_v38 = vpop.f32.mrb[3].mxu1 }
 0x105   :  { %348 = vst [vmem:[#allocation2] sm:$0xff] %v332_v31  ;;  %356 = vst [vmem:[#allocation2 + $0x40] sm:$0xff] %v340_v32  ;;  %v333_v39 = vadd.f32 %v272_v37, %v108_v29  ;;  %v341_v40 = vadd.f32 %v304_v38, %v116_v30 }
 0x106   :  { %351 = vst [vmem:[#allocation2 + $0x18] sm:$0xff] %v335_v35  ;;  %359 = vst [vmem:[#allocation2 + $0x58] sm:$0xff] %v343_v36 }
 0x107   :  { %349 = vst [vmem:[#allocation2 + $0x8] sm:$0xff] %v333_v39  ;;  %357 = vst [vmem:[#allocation2 + $0x48] sm:$0xff] %v341_v40 }
 0x109   :  { %v890_v45 = vpop.f32.mrb[4].mxu0  ;;  %v898_v46 = vpop.f32.mrb[4].mxu1 }
 0x10a   :  { %v338_v49 = vadd.f32 %v890_v45, %v113_v41  ;;  %v346_v50 = vadd.f32 %v898_v46, %v121_v42  ;;  %v285_v51 = vpop.f32.mrb[5].mxu0  ;;  %v317_v52 = vpop.f32.mrb[5].mxu1 }
 0x10b   :  { %v336_v55 = vadd.f32 %v285_v51, %v111_v43  ;;  %v344_v56 = vadd.f32 %v317_v52, %v119_v44  ;;  %v891_v57 = vpop.f32.mrb[6].mxu0  ;;  %v899_v58 = vpop.f32.mrb[6].mxu1 }
 0x10c   :  { %354 = vst [vmem:[#allocation2 + $0x30] sm:$0xff] %v338_v49  ;;  %362 = vst [vmem:[#allocation2 + $0x70] sm:$0xff] %v346_v50  ;;  %v339_v59 = vadd.f32 %v891_v57, %v114_v47  ;;  %v347_v60 = vadd.f32 %v899_v58, %v122_v48  ;;  %v288_v61 = vpop.f32.mrb[7].mxu0  ;;  %v320_v62 = vpop.f32.mrb[7].mxu1 }
 0x10d   :  { %352 = vst [vmem:[#allocation2 + $0x20] sm:$0xff] %v336_v55  ;;  %360 = vst [vmem:[#allocation2 + $0x60] sm:$0xff] %v344_v56  ;;  %v337_v63 = vadd.f32 %v288_v61, %v112_v53  ;;  %v345_v0 = vadd.f32 %v320_v62, %v120_v54 }
 0x10e   :  { %355 = vst [vmem:[#allocation2 + $0x38] sm:$0xff] %v339_v59  ;;  %363 = vst [vmem:[#allocation2 + $0x78] sm:$0xff] %v347_v60 }
 0x10f   :  { %353 = vst [vmem:[#allocation2 + $0x28] sm:$0xff] %v337_v63  ;;  %361 = vst [vmem:[#allocation2 + $0x68] sm:$0xff] %v345_v0 }
 0x110 PF:  { %v981_v1 = vld [vmem:[%s1351_s5] sm:$0xff]   ;;  %v982_v2 = vld [vmem:[%s1351_s5 + $0x8] sm:$0xff]   ;;  %v983_v3 = vld [vmem:[%s1351_s5 + $0x10] sm:$0xff]  }
 0x111   :  { %900 = vmatprep.subr.bf16.mxu0 %v981_v1  ;;  %948 = vmatprep.subr.bf16.mxu1 %v981_v1  ;;  %v984_v4 = vld [vmem:[%s1351_s5 + $0x18] sm:$0xff]   ;;  %v367_v5 = vld [vmem:[#allocation2] sm:$0xff]  ;;  %v368_v6 = vld [vmem:[#allocation2 + $0x8] sm:$0xff] }
 0x112   :  { %901 = vmatpush3.bf16.msra.mxu0 %v981_v1  ;;  %956 = vmatpush3.bf16.msra.mxu1 %v981_v1  ;;  %v1151_v7 = vld [vmem:[%s1350_s4] ss:$0 sm:$0xff]  ;;  %v376_v11 = vld [vmem:[#allocation2 + $0x48] sm:$0xff]  ;;  %v987_v22 = vld [vmem:[%s1351_s5 + $0x30] sm:$0xff]  }
 0x113   :  { %902 = vmatprep.subr.bf16.mxu0 %v982_v2  ;;  %949 = vmatprep.subr.bf16.mxu1 %v982_v2  ;;  %v390_v8 = vadd.f32 %v1151_v7, %v367_v5  ;;  %v391_v9 = vadd.f32 %v1151_v7, %v368_v6  ;;  %v375_v10 = vld [vmem:[#allocation2 + $0x40] sm:$0xff]  ;;  %v399_v13 = vadd.f32 %v1151_v7, %v376_v11  ;;  %v986_v21 = vld [vmem:[%s1351_s5 + $0x28] sm:$0xff]   ;;  %v369_v23 = vld [vmem:[#allocation2 + $0x10] sm:$0xff] }
 0x114   :  { %v398_v12 = vadd.f32 %v1151_v7, %v375_v10  ;;  %v985_v16 = vld [vmem:[%s1351_s5 + $0x20] sm:$0xff]   ;;  %v370_v24 = vld [vmem:[#allocation2 + $0x18] sm:$0xff]  ;;  %v377_v25 = vld [vmem:[#allocation2 + $0x50] sm:$0xff]  ;;  %v392_v31 = vadd.f32 %v1151_v7, %v369_v23 }
 0x115   :  { %v406_v14 = vmax.f32 %v390_v8, 0.0  ;;  %v407_v15 = vmax.f32 %v391_v9, 0.0  ;;  %v415_v18 = vmax.f32 %v399_v13, 0.0  ;;  %v378_v26 = vld [vmem:[#allocation2 + $0x58] sm:$0xff]  ;;  %v371_v27 = vld [vmem:[#allocation2 + $0x20] sm:$0xff]  ;;  %v393_v32 = vadd.f32 %v1151_v7, %v370_v24  ;;  %v373_v44 = vld [vmem:[#allocation2 + $0x30] sm:$0xff] }
 0x116   :  { %903 = vmatpush3.bf16.msra.mxu0 %v982_v2  ;;  %957 = vmatpush3.bf16.msra.mxu1 %v982_v2  ;;  %v414_v17 = vmax.f32 %v398_v12, 0.0  ;;  %v372_v28 = vld [vmem:[#allocation2 + $0x28] sm:$0xff]  ;;  %v379_v29 = vld [vmem:[#allocation2 + $0x60] sm:$0xff]  ;;  %v400_v33 = vadd.f32 %v1151_v7, %v377_v25  ;;  %v401_v34 = vadd.f32 %v1151_v7, %v378_v26  ;;  %v394_v35 = vadd.f32 %v1151_v7, %v371_v27  ;;  %v988_v39 = vld [vmem:[%s1351_s5 + $0x38] sm:$0xff]  }
 0x117   :  { %904 = vmatprep.subr.bf16.mxu0 %v983_v3  ;;  %950 = vmatprep.subr.bf16.mxu1 %v983_v3  ;;  %v422_v19 = vpack.c.bf16 %v407_v15, %v406_v14  ;;  %v380_v30 = vld [vmem:[#allocation2 + $0x68] sm:$0xff]  ;;  %v395_v36 = vadd.f32 %v1151_v7, %v372_v28  ;;  %v402_v37 = vadd.f32 %v1151_v7, %v379_v29  ;;  %v408_v40 = vmax.f32 %v392_v31, 0.0  ;;  %v374_v45 = vld [vmem:[#allocation2 + $0x38] sm:$0xff]  ;;  %v381_v50 = vld [vmem:[#allocation2 + $0x70] sm:$0xff] }
 0x118   :  { %v426_v20 = vpack.c.bf16 %v415_v18, %v414_v17  ;;  %v403_v38 = vadd.f32 %v1151_v7, %v380_v30  ;;  %v409_v41 = vmax.f32 %v393_v32, 0.0  ;;  %v416_v42 = vmax.f32 %v400_v33, 0.0  ;;  %v382_v51 = vld [vmem:[#allocation2 + $0x78] sm:$0xff] }
 0x119   :  { %916 = vmatprep.mubr.bf16.mxu0 %v422_v19  ;;  %v417_v43 = vmax.f32 %v401_v34, 0.0  ;;  %v410_v46 = vmax.f32 %v394_v35, 0.0  ;;  %v411_v47 = vmax.f32 %v395_v36, 0.0  ;;  %v418_v48 = vmax.f32 %v402_v37, 0.0 }
 0x11a   :  { %905 = vmatpush3.bf16.msra.mxu0 %v983_v3  ;;  %958 = vmatpush3.bf16.msra.mxu1 %v983_v3  ;;  %v419_v49 = vmax.f32 %v403_v38, 0.0  ;;  %v423_v52 = vpack.c.bf16 %v409_v41, %v408_v40  ;;  %v396_v53 = vadd.f32 %v1151_v7, %v373_v44  ;;  %v397_v55 = vadd.f32 %v1151_v7, %v374_v45 }
 0x11b   :  { %906 = vmatprep.subr.bf16.mxu0 %v984_v4  ;;  %951 = vmatprep.subr.bf16.mxu1 %v984_v4  ;;  %v427_v54 = vpack.c.bf16 %v417_v43, %v416_v42  ;;  %v404_v56 = vadd.f32 %v1151_v7, %v381_v50  ;;  %v405_v57 = vadd.f32 %v1151_v7, %v382_v51  ;;  %v598_v2 = vlaneseq }
 0x11c   :  { %924 = vmatprep.mubr.bf16.mxu1 %v426_v20  ;;  %v424_v58 = vpack.c.bf16 %v411_v47, %v410_v46  ;;  %v428_v59 = vpack.c.bf16 %v419_v49, %v418_v48  ;;  %v412_v60 = vmax.f32 %v396_v53, 0.0  ;;  %v413_v61 = vmax.f32 %v397_v55, 0.0 }
 0x11d   :  { %v420_v62 = vmax.f32 %v404_v56, 0.0  ;;  %v421_v63 = vmax.f32 %v405_v57, 0.0  ;;  %v1181_v3 = vand.u32 127, %v598_v2 }
 0x11e   :  { %907 = vmatpush3.bf16.msra.mxu0 %v984_v4  ;;  %959 = vmatpush3.bf16.msra.mxu1 %v984_v4  ;;  %v425_v0 = vpack.c.bf16 %v413_v61, %v412_v60  ;;  %v827_v4 = vld [vmem:[%s1352_s6] ss:$0 sm:$0xff] }
 0x11f   :  { %908 = vmatprep.subr.bf16.mxu0 %v985_v16  ;;  %952 = vmatprep.subr.bf16.mxu1 %v985_v16  ;;  %v429_v1 = vpack.c.bf16 %v421_v63, %v420_v62  ;;  %vm600_vm0 = vcmp.lt.s32.totalorder %v1181_v3, 4 }
 0x122   :  { %909 = vmatpush3.bf16.msra.mxu0 %v985_v16  ;;  %960 = vmatpush3.bf16.msra.mxu1 %v985_v16 }
 0x123   :  { %910 = vmatprep.subr.bf16.mxu0 %v986_v21  ;;  %953 = vmatprep.subr.bf16.mxu1 %v986_v21 }
 0x126   :  { %911 = vmatpush3.bf16.msra.mxu0 %v986_v21  ;;  %961 = vmatpush3.bf16.msra.mxu1 %v986_v21 }
 0x127   :  { %912 = vmatprep.subr.bf16.mxu0 %v987_v22  ;;  %954 = vmatprep.subr.bf16.mxu1 %v987_v22 }
 0x12a   :  { %913 = vmatpush3.bf16.msra.mxu0 %v987_v22  ;;  %962 = vmatpush3.bf16.msra.mxu1 %v987_v22 }
 0x12b   :  { %914 = vmatprep.subr.bf16.mxu0 %v988_v39  ;;  %955 = vmatprep.subr.bf16.mxu1 %v988_v39 }
 0x12e   :  { %915 = vmatpush3.bf16.msra.mxu0 %v988_v39  ;;  %963 = vmatpush3.bf16.msra.mxu1 %v988_v39 }
 0x131   :  { %917 = vmatmul.mubr.bf16.vlgmr.msra.gmra.mrb[0].mxu0 %v423_v52  ;;  %925 = vmatmul.mubr.bf16.vlgmr.msra.gmra.mrb[0].mxu1 %v427_v54 }
 0x132   :  { %920 = vmatprep.mubr.bf16.mxu0 %v424_v58  ;;  %928 = vmatprep.mubr.bf16.mxu1 %v428_v59 }
 0x139   :  { %921 = vmatmul.mubr.bf16.gmra.mrb[4].mxu0 %v425_v0  ;;  %929 = vmatmul.mubr.bf16.gmra.mrb[4].mxu1 %v429_v1 }
 0x204   :  { %v918_v5 = vpop.f32.mrb[0].mxu0  ;;  %v926_v6 = vpop.f32.mrb[0].mxu1 }
 0x205   :  { %v544_v7 = vadd.f32 %v918_v5, %v827_v4  ;;  %v576_v8 = vadd.f32 %v926_v6, %v827_v4  ;;  %v535_v9 = vpop.f32.mrb[1].mxu0  ;;  %v567_v10 = vpop.f32.mrb[1].mxu1 }
 0x206   :  { %v919_v11 = vpop.f32.mrb[2].mxu0  ;;  %v927_v12 = vpop.f32.mrb[2].mxu1  ;;  %v536_v13 = vadd.f32 %v827_v4, %v535_v9  ;;  %v568_v19 = vadd.f32 %v827_v4, %v567_v10 }
 0x207   :  { %v547_v14 = vadd.f32 %v919_v11, %v827_v4  ;;  %v538_v15 = vpop.f32.mrb[3].mxu0  ;;  %v570_v16 = vpop.f32.mrb[3].mxu1  ;;  %v611_v17 = vsel %vm600_vm0, %v576_v8, -1e+30  ;;  %v603_v18 = vsel %vm600_vm0, %v544_v7, -1e+30  ;;  %v579_v20 = vadd.f32 %v927_v12, %v827_v4 }
 0x208   :  { %637 = vmax.xlane.f32.xlu0 %v611_v17  ;;  %621 = vmax.xlane.f32.xlu1 %v603_v18  ;;  %v601_v22 = vsel %vm600_vm0, %v536_v13, -1e+30  ;;  %v539_v29 = vadd.f32 %v827_v4, %v538_v15  ;;  %v571_v30 = vadd.f32 %v827_v4, %v570_v16  ;;  %v609_v32 = vsel %vm600_vm0, %v568_v19, -1e+30 }
 0x209   :  { %v604_v21 = vsel %vm600_vm0, %v547_v14, -1e+30  ;;  %v612_v31 = vsel %vm600_vm0, %v579_v20, -1e+30 }
 0x20a   :  { %v610_v37 = vsel %vm600_vm0, %v571_v30, -1e+30  ;;  %v602_v38 = vsel %vm600_vm0, %v539_v29, -1e+30 }
 0x20c   :  { %623 = vmax.xlane.f32.xlu1 %v604_v21  ;;  %617 = vmax.xlane.f32.xlu0 %v601_v22  ;;  %v922_v23 = vpop.f32.mrb[4].mxu0  ;;  %v930_v24 = vpop.f32.mrb[4].mxu1 }
 0x20d   :  { %v551_v25 = vpop.f32.mrb[5].mxu0  ;;  %v583_v26 = vpop.f32.mrb[5].mxu1  ;;  %v560_v35 = vadd.f32 %v922_v23, %v827_v4  ;;  %v592_v49 = vadd.f32 %v930_v24, %v827_v4 }
 0x20e   :  { %v923_v27 = vpop.f32.mrb[6].mxu0  ;;  %v931_v28 = vpop.f32.mrb[6].mxu1  ;;  %v552_v41 = vadd.f32 %v827_v4, %v551_v25  ;;  %v584_v43 = vadd.f32 %v827_v4, %v583_v26 }
 0x20f   :  { %v554_v33 = vpop.f32.mrb[7].mxu0  ;;  %v586_v34 = vpop.f32.mrb[7].mxu1  ;;  %v563_v36 = vadd.f32 %v923_v27, %v827_v4  ;;  %v607_v40 = vsel %vm600_vm0, %v560_v35, -1e+30  ;;  %v595_v50 = vadd.f32 %v931_v28, %v827_v4  ;;  %v1227_v52 = vsel %vm600_vm0, %v592_v49, -1e+30 }
 0x210   :  { %639 = vmax.xlane.f32.xlu1 %v612_v31  ;;  %633 = vmax.xlane.f32.xlu0 %v609_v32  ;;  %v555_v42 = vadd.f32 %v827_v4, %v554_v33  ;;  %v587_v44 = vadd.f32 %v827_v4, %v586_v34  ;;  %v605_v46 = vsel %vm600_vm0, %v552_v41, -1e+30  ;;  %v1217_v48 = vsel %vm600_vm0, %v584_v43, -1e+30 }
 0x211   :  { %v608_v39 = vsel %vm600_vm0, %v563_v36, -1e+30  ;;  %v1223_v51 = vsel %vm600_vm0, %v595_v50, -1e+30 }
 0x212   :  { %v606_v45 = vsel %vm600_vm0, %v555_v42, -1e+30  ;;  %v1213_v47 = vsel %vm600_vm0, %v587_v44, -1e+30 }
 0x214   :  { %635 = vmax.xlane.f32.xlu1 %v610_v37  ;;  %619 = vmax.xlane.f32.xlu0 %v602_v38 }
 0x218   :  { %631 = vmax.xlane.f32.xlu1 %v608_v39  ;;  %629 = vmax.xlane.f32.xlu0 %v607_v40 }
 0x21c   :  { %627 = vmax.xlane.f32.xlu1 %v606_v45  ;;  %625 = vmax.xlane.f32.xlu0 %v605_v46 }
 0x220   :  { %643 = vmax.xlane.f32.xlu1 %v1213_v47  ;;  %641 = vmax.xlane.f32.xlu0 %v1217_v48 }
 0x224   :  { %647 = vmax.xlane.f32.xlu1 %v1223_v51  ;;  %645 = vmax.xlane.f32.xlu0 %v1227_v52 }
 0x295   :  { %v638_v53 = vpop.xlane.xlu0 %637  ;;  %v622_v54 = vpop.xlane.xlu1 %621 }
 0x296   :  { %v1231_v55 = vsub.f32 %v603_v18, %v622_v54  ;;  %v1233_v56 = vsub.f32 %v611_v17, %v638_v53 }
 0x298   :  { %v669_v57 = vmul.f32 1.442695, %v1231_v55  ;;  %v685_v61 = vmul.f32 1.442695, %v1233_v56 }
 0x299   :  { %v624_v58 = vpop.xlane.xlu1 %623  ;;  %v618_v59 = vpop.xlane.xlu0 %617 }
 0x29a   :  { %v1236_v60 = vsub.f32 %v604_v21, %v624_v58  ;;  %989 = vpow2.f32 %v669_v57  ;;  %v1239_v62 = vsub.f32 %v601_v22, %v618_v59 }
 0x29c   :  { %v671_v63 = vmul.f32 1.442695, %v1236_v60  ;;  %v665_v4 = vmul.f32 1.442695, %v1239_v62 }
 0x29d   :  { %v640_v0 = vpop.xlane.xlu1 %639  ;;  %v634_v1 = vpop.xlane.xlu0 %633 }
 0x29e   :  { %991 = vpow2.f32 %v671_v63  ;;  %v1242_v2 = vsub.f32 %v612_v31, %v640_v0  ;;  %v1244_v3 = vsub.f32 %v609_v32, %v634_v1 }
 0x29f   :  { %993 = vpow2.f32 %v685_v61 }
 0x2a0   :  { %v687_v5 = vmul.f32 1.442695, %v1242_v2  ;;  %v681_v8 = vmul.f32 1.442695, %v1244_v3 }
 0x2a1   :  { %v636_v6 = vpop.xlane.xlu1 %635  ;;  %v620_v7 = vpop.xlane.xlu0 %619 }
 0x2a2   :  { %995 = vpow2.f32 %v687_v5  ;;  %v1249_v9 = vsub.f32 %v610_v37, %v636_v6  ;;  %v1251_v10 = vsub.f32 %v602_v38, %v620_v7 }
 0x2a3   :  { %997 = vpow2.f32 %v665_v4 }
 0x2a4   :  { %v667_v11 = vmul.f32 1.442695, %v1251_v10  ;;  %v990_v12 = vpop.eup %989  ;;  %999 = vpow2.f32 %v681_v8  ;;  %v683_v15 = vmul.f32 1.442695, %v1249_v9 }
 0x2a5   :  { %v632_v13 = vpop.xlane.xlu1 %631  ;;  %v630_v14 = vpop.xlane.xlu0 %629  ;;  %701 = vadd.xlane.f32.xlu0 %v990_v12 }
 0x2a6   :  { %v1255_v16 = vsub.f32 %v608_v39, %v632_v13  ;;  %v1257_v17 = vsub.f32 %v607_v40, %v630_v14  ;;  %1001 = vpow2.f32 %v667_v11 }
 0x2a7   :  { %1003 = vpow2.f32 %v683_v15 }
 0x2a8   :  { %v992_v18 = vpop.eup %991  ;;  %v677_v19 = vmul.f32 1.442695, %v1257_v17  ;;  %v679_v23 = vmul.f32 1.442695, %v1255_v16 }
 0x2a9   :  { %v994_v20 = vpop.eup %993  ;;  %703 = vadd.xlane.f32.xlu1 %v992_v18  ;;  %v628_v21 = vpop.xlane.xlu1 %627 }
 0x2aa   :  { %v626_v22 = vpop.xlane.xlu0 %625  ;;  %v1261_v24 = vsub.f32 %v606_v45, %v628_v21  ;;  %717 = vadd.xlane.f32.xlu0 %v994_v20  ;;  %1005 = vpow2.f32 %v677_v19 }
 0x2ab   :  { %v1263_v25 = vsub.f32 %v605_v46, %v626_v22  ;;  %1007 = vpow2.f32 %v679_v23 }
 0x2ac   :  { %v996_v26 = vpop.eup %995  ;;  %v675_v31 = vmul.f32 1.442695, %v1261_v24 }
 0x2ad   :  { %v673_v27 = vmul.f32 1.442695, %v1263_v25  ;;  %v998_v28 = vpop.eup %997  ;;  %719 = vadd.xlane.f32.xlu1 %v996_v26  ;;  %v644_v29 = vpop.xlane.xlu1 %643 }
 0x2ae   :  { %v642_v30 = vpop.xlane.xlu0 %641  ;;  %v1268_v32 = vsub.f32 %v1213_v47, %v644_v29  ;;  %697 = vadd.xlane.f32.xlu0 %v998_v28  ;;  %v1000_v34 = vpop.eup %999 }
 0x2af   :  { %v1271_v33 = vsub.f32 %v1217_v48, %v642_v30  ;;  %1009 = vpow2.f32 %v673_v27 }
 0x2b0   :  { %v1002_v36 = vpop.eup %1001  ;;  %1011 = vpow2.f32 %v675_v31  ;;  %v691_v39 = vmul.f32 1.442695, %v1268_v32 }
 0x2b1   :  { %v689_v35 = vmul.f32 1.442695, %v1271_v33  ;;  %v648_v37 = vpop.xlane.xlu1 %647  ;;  %699 = vadd.xlane.f32.xlu1 %v1002_v36  ;;  %v1004_v42 = vpop.eup %1003 }
 0x2b2   :  { %v646_v38 = vpop.xlane.xlu0 %645  ;;  %713 = vadd.xlane.f32.xlu0 %v1000_v34  ;;  %v1279_v41 = vsub.f32 %v1223_v51, %v648_v37 }
 0x2b3   :  { %v1276_v40 = vsub.f32 %v1227_v52, %v646_v38  ;;  %1013 = vpow2.f32 %v689_v35 }
 0x2b4   :  { %v1006_v44 = vpop.eup %1005  ;;  %1015 = vpow2.f32 %v691_v39  ;;  %v695_v45 = vmul.f32 1.442695, %v1279_v41 }
 0x2b5   :  { %v693_v43 = vmul.f32 1.442695, %v1276_v40  ;;  %715 = vadd.xlane.f32.xlu1 %v1004_v42  ;;  %v1008_v46 = vpop.eup %1007 }
 0x2b6   :  { %709 = vadd.xlane.f32.xlu0 %v1006_v44 }
 0x2b7   :  { %1017 = vpow2.f32 %v693_v43 }
 0x2b8   :  { %1019 = vpow2.f32 %v695_v45 }
 0x2b9   :  { %v1010_v47 = vpop.eup %1009  ;;  %711 = vadd.xlane.f32.xlu1 %v1008_v46 }
 0x2ba   :  { %705 = vadd.xlane.f32.xlu0 %v1010_v47  ;;  %v1012_v48 = vpop.eup %1011 }
 0x2bd   :  { %v1014_v49 = vpop.eup %1013  ;;  %707 = vadd.xlane.f32.xlu1 %v1012_v48 }
 0x2be   :  { %721 = vadd.xlane.f32.xlu0 %v1014_v49  ;;  %v1016_v50 = vpop.eup %1015 }
 0x2c1   :  { %v1018_v51 = vpop.eup %1017  ;;  %723 = vadd.xlane.f32.xlu1 %v1016_v50 }
 0x2c2   :  { %725 = vadd.xlane.f32.xlu0 %v1018_v51  ;;  %v1020_v52 = vpop.eup %1019 }
 0x2c5   :  { %727 = vadd.xlane.f32.xlu1 %v1020_v52 }
 0x332   :  { %v702_v53 = vpop.xlane.xlu0 %701 }
 0x333   :  { %1021 = vlog2.f32 %v702_v53 }
 0x336   :  { %v704_v54 = vpop.xlane.xlu1 %703 }
 0x337   :  { %1023 = vlog2.f32 %v704_v54  ;;  %v718_v57 = vpop.xlane.xlu0 %717 }
 0x338   :  { %1025 = vlog2.f32 %v718_v57 }
 0x33a   :  { %v720_v58 = vpop.xlane.xlu1 %719 }
 0x33b   :  { %1027 = vlog2.f32 %v720_v58  ;;  %v698_v59 = vpop.xlane.xlu0 %697 }
 0x33c   :  { %1029 = vlog2.f32 %v698_v59 }
 0x33d   :  { %v1022_v61 = vpop.eup %1021 }
 0x33e   :  { %v734_v63 = vmul.f32 0.6931472, %v1022_v61  ;;  %v700_v0 = vpop.xlane.xlu1 %699 }
 0x33f   :  { %v714_v1 = vpop.xlane.xlu0 %713  ;;  %1031 = vlog2.f32 %v700_v0 }
 0x340   :  { %v763_v5 = vsub.f32 %v1231_v55, %v734_v63  ;;  %1033 = vlog2.f32 %v714_v1 }
 0x341   :  { %v1024_v4 = vpop.eup %1023 }
 0x342   :  { %v1026_v6 = vpop.eup %1025  ;;  %v736_v7 = vmul.f32 0.6931472, %v1024_v4  ;;  %779 = vst [vmem:[%s1353_s7 + $0x10] sm:$0xff] %v763_v5  ;;  %v716_v11 = vpop.xlane.xlu1 %715 }
 0x343   :  { %v750_v8 = vmul.f32 0.6931472, %v1026_v6  ;;  %v710_v12 = vpop.xlane.xlu0 %709  ;;  %1035 = vlog2.f32 %v716_v11 }
 0x344   :  { %v764_v13 = vsub.f32 %v1236_v60, %v736_v7  ;;  %1037 = vlog2.f32 %v710_v12 }
 0x345   :  { %v1028_v14 = vpop.eup %1027  ;;  %v771_v15 = vsub.f32 %v1233_v56, %v750_v8 }
 0x346   :  { %v1030_v18 = vpop.eup %1029  ;;  %780 = vst [vmem:[%s1353_s7 + $0x18] sm:$0xff] %v764_v13  ;;  %v752_v55 = vmul.f32 0.6931472, %v1028_v14  ;;  %v712_v20 = vpop.xlane.xlu1 %711 }
 0x347   :  { %787 = vst [vmem:[%s1353_s7 + $0x50] sm:$0xff] %v771_v15  ;;  %v730_v19 = vmul.f32 0.6931472, %v1030_v18  ;;  %v706_v21 = vpop.xlane.xlu0 %705  ;;  %1039 = vlog2.f32 %v712_v20 }
 0x348   :  { %v772_v60 = vsub.f32 %v1242_v2, %v752_v55  ;;  %1041 = vlog2.f32 %v706_v21 }
 0x349   :  { %v761_v22 = vsub.f32 %v1239_v62, %v730_v19  ;;  %v1032_v56 = vpop.eup %1031 }
 0x34a   :  { %788 = vst [vmem:[%s1353_s7 + $0x58] sm:$0xff] %v772_v60  ;;  %v1034_v23 = vpop.eup %1033  ;;  %v732_v26 = vmul.f32 0.6931472, %v1032_v56  ;;  %v708_v27 = vpop.xlane.xlu1 %707 }
 0x34b   :  { %777 = vst [vmem:[%s1353_s7] sm:$0xff] %v761_v22  ;;  %v722_v28 = vpop.xlane.xlu0 %721  ;;  %v746_v29 = vmul.f32 0.6931472, %v1034_v23  ;;  %1043 = vlog2.f32 %v708_v27 }
 0x34c   :  { %v762_v2 = vsub.f32 %v1251_v10, %v732_v26  ;;  %1045 = vlog2.f32 %v722_v28 }
 0x34d   :  { %v1036_v62 = vpop.eup %1035  ;;  %v769_v30 = vsub.f32 %v1244_v3, %v746_v29 }
 0x34e   :  { %v1038_v31 = vpop.eup %1037  ;;  %778 = vst [vmem:[%s1353_s7 + $0x8] sm:$0xff] %v762_v2  ;;  %v748_v34 = vmul.f32 0.6931472, %v1036_v62  ;;  %v724_v35 = vpop.xlane.xlu1 %723 }
 0x34f   :  { %v726_v36 = vpop.xlane.xlu0 %725  ;;  %785 = vst [vmem:[%s1353_s7 + $0x40] sm:$0xff] %v769_v30  ;;  %v742_v37 = vmul.f32 0.6931472, %v1038_v31  ;;  %1047 = vlog2.f32 %v724_v35 }
 0x350   :  { %v770_v10 = vsub.f32 %v1249_v9, %v748_v34  ;;  %1049 = vlog2.f32 %v726_v36 }
 0x351   :  { %v1040_v38 = vpop.eup %1039  ;;  %v767_v3 = vsub.f32 %v1257_v17, %v742_v37 }
 0x352   :  { %v1042_v39 = vpop.eup %1041  ;;  %786 = vst [vmem:[%s1353_s7 + $0x48] sm:$0xff] %v770_v10  ;;  %v744_v42 = vmul.f32 0.6931472, %v1040_v38  ;;  %v728_v43 = vpop.xlane.xlu1 %727 }
 0x353   :  { %783 = vst [vmem:[%s1353_s7 + $0x30] sm:$0xff] %v767_v3  ;;  %v738_v44 = vmul.f32 0.6931472, %v1042_v39  ;;  %1051 = vlog2.f32 %v728_v43 }
 0x354   :  { %v768_v45 = vsub.f32 %v1255_v16, %v744_v42 }
 0x355   :  { %v1044_v9 = vpop.eup %1043  ;;  %v765_v46 = vsub.f32 %v1263_v25, %v738_v44 }
 0x356   :  { %v1046_v47 = vpop.eup %1045  ;;  %784 = vst [vmem:[%s1353_s7 + $0x38] sm:$0xff] %v768_v45  ;;  %v740_v17 = vmul.f32 0.6931472, %v1044_v9 }
 0x357   :  { %781 = vst [vmem:[%s1353_s7 + $0x20] sm:$0xff] %v765_v46  ;;  %v754_v48 = vmul.f32 0.6931472, %v1046_v47 }
 0x358   :  { %v766_v49 = vsub.f32 %v1261_v24, %v740_v17 }
 0x359   :  { %v1048_v50 = vpop.eup %1047  ;;  %v773_v51 = vsub.f32 %v1271_v33, %v754_v48 }
 0x35a   :  { %v1050_v16 = vpop.eup %1049  ;;  %782 = vst [vmem:[%s1353_s7 + $0x28] sm:$0xff] %v766_v49  ;;  %v756_v25 = vmul.f32 0.6931472, %v1048_v50 }
 0x35b   :  { %789 = vst [vmem:[%s1353_s7 + $0x60] sm:$0xff] %v773_v51  ;;  %v758_v52 = vmul.f32 0.6931472, %v1050_v16 }
 0x35c   :  { %v774_v53 = vsub.f32 %v1268_v32, %v756_v25 }
 0x35d   :  { %v1052_v54 = vpop.eup %1051  ;;  %v775_v57 = vsub.f32 %v1276_v40, %v758_v52 }
 0x35e   :  { %790 = vst [vmem:[%s1353_s7 + $0x68] sm:$0xff] %v774_v53  ;;  %v760_v24 = vmul.f32 0.6931472, %v1052_v54 }
 0x35f   :  { %791 = vst [vmem:[%s1353_s7 + $0x70] sm:$0xff] %v775_v57 }
 0x360   :  { %v776_v33 = vsub.f32 %v1279_v41, %v760_v24 }
 0x362   :  { %792 = vst [vmem:[%s1353_s7 + $0x78] sm:$0xff] %v776_v33 }

</bundles_post_ra>
